<compile_context>
chip_gen: v7x
topology: tpu7x:2x2x1
jax: 0.10.0
libtpu: 0.0.40
codegen_flags: <defaults>
</compile_context>

<pallas_src>
import jax
import jax.numpy as jnp
from jax.experimental import pallas as pl
from jax.experimental.pallas import tpu as pltpu

BN_EPS = 1e-5
_HIGH = jax.lax.Precision.HIGHEST


# --------------------------------------------------------------------------
# Weight-matrix builders (wrapper-side, traced once per call)
# --------------------------------------------------------------------------

def _banded_conv_weight(w_oihw, W, pad_w):
    """Conv2d weight (Cout, Cin, 3, 3) -> banded matrices (3, Wp*Cin, W*Cout).

    The dx taps and the W-direction zero padding are folded into the matrix:
      out[h, x*Cout+co] = sum_dy  in_row[h+dy] @ band[dy]
    pad_w=1: input is W-padded (Wp=W+2), source col = x+dx.
    pad_w=0: input is unpadded (Wp=W), source col = x+dx-1 (edge taps drop out).
    """
    Cout, Cin = w_oihw.shape[0], w_oihw.shape[1]
    Wp = W + 2 * pad_w
    wt = jnp.transpose(w_oihw, (2, 3, 1, 0)).astype(jnp.float32)      # (dy, dx, ci, co)
    x = jnp.arange(W)[:, None, None]
    dx = jnp.arange(3)[None, :, None]
    p = jnp.arange(Wp)[None, None, :]
    src = x + dx - (1 - pad_w)
    ind = ((src == p) & (src >= 0) & (src < Wp)).astype(jnp.float32)  # (W, 3, Wp)
    band = jnp.einsum("xdp,edio->epixo", ind, wt, precision=_HIGH)    # (3,Wp,Ci,W,Co)
    return band.reshape(3, Wp * Cin, W * Cout)


def _upsample_weight(w_iohw, b, W1, Wp, dw_lo):
    """ConvTranspose2d(k=2,s=2) weight (Cin, Cmid, 2, 2) -> per-row-parity matrices.

    Returns wu (2, W1*Cin, Wp*Cmid) and a bias row (1, Wp*Cmid).  The W sub-pixel
    interleave, the diff_w pad and the +1 conv pad are folded into the columns.
    """
    Cin, Cmid = w_iohw.shape[0], w_iohw.shape[1]
    w = w_iohw.astype(jnp.float32)                                     # (ci, co, di, dj)
    j = jnp.arange(W1)[:, None, None]
    dj = jnp.arange(2)[None, :, None]
    p = jnp.arange(Wp)[None, None, :]
    ind = ((1 + dw_lo + 2 * j + dj) == p).astype(jnp.float32)          # (W1, 2, Wp)
    wu = jnp.einsum("jdp,ioed->ejipo", ind, w, precision=_HIGH)        # (2,W1,Ci,Wp,Co)
    wu = wu.reshape(2, W1 * Cin, Wp * Cmid)
    pcol = jnp.arange(Wp)
    valid = (pcol >= 1 + dw_lo) & (pcol < 1 + dw_lo + 2 * W1)
    brow = jnp.where(valid[:, None], b.astype(jnp.float32)[None, :], 0.0)
    return wu, brow.reshape(1, Wp * Cmid)


def _tile_lanes(v, W):
    """Per-channel vector (C,) -> lane-dense row (1, W*C) matching the (x, c) layout."""
    C = v.shape[-1]
    return jnp.tile(v.reshape(1, C).astype(jnp.float32), (1, W))


def _params(semantics, block_bytes):
    vmem = int(min(64 * 2 ** 20, max(32 * 2 ** 20, 2 * block_bytes + (4 << 20))))
    return pltpu.CompilerParams(dimension_semantics=semantics,
                                vmem_limit_bytes=vmem)


# --------------------------------------------------------------------------
# Pallas kernels
# --------------------------------------------------------------------------

def _upsample_kernel(x_ref, w_ref, brow_ref, o_ref):
    # x: (1, H1, W1*Cin); w: (2, W1*Cin, Wp*Cmid); brow: (1, Wp*Cmid)
    # o: (1, 2, H1, Wp*Cmid) -- row parities kept separate (interleaved in XLA glue).
    x = x_ref[0]
    o_ref[0, 0] = (jnp.dot(x, w_ref[0], preferred_element_type=jnp.float32)
                   + brow_ref[...])
    o_ref[0, 1] = (jnp.dot(x, w_ref[1], preferred_element_type=jnp.float32)
                   + brow_ref[...])


def _conv1_kernel(xa_ref, xb_ref, wa_ref, wb_ref, brow_ref, o_ref, s_ref, q_ref):
    # xa: (1, Hp, Wp*Ca) padded x2; xb: (1, Hp, Wp*Cb) padded upsampled x1.
    # wa/wb: (3, Wp*C?, W*Cout) banded taps; brow: (1, W*Cout).
    # o: (1, H, W*Cout) lane-dense unpadded; s/q: (1, 1, W*Cout) per-image partials.
    H, Lo = o_ref.shape[1], o_ref.shape[2]
    xa = xa_ref[0]
    xb = xb_ref[0]
    acc = jnp.zeros((H, Lo), jnp.float32)
    for dy in range(3):                                   # static unroll, 6 MXU calls
        acc += jnp.dot(xa[dy:dy + H, :], wa_ref[dy],
                       preferred_element_type=jnp.float32)
        acc += jnp.dot(xb[dy:dy + H, :], wb_ref[dy],
                       preferred_element_type=jnp.float32)
    acc += brow_ref[...]
    o_ref[0] = acc
    s_ref[0] = jnp.sum(acc, axis=0, keepdims=True)
    q_ref[0] = jnp.sum(acc * acc, axis=0, keepdims=True)


def _conv2_kernel(x_ref, scale_ref, shift_ref, w_ref, brow_ref, o_ref, s_ref, q_ref):
    # Prologue: BN1 scale/shift + ReLU (input is unpadded -> no border mask needed).
    # The H halo is built in-register; the W halo lives in the banded weights.
    H, L = x_ref.shape[1], x_ref.shape[2]
    h = jnp.maximum(x_ref[0] * scale_ref[...] + shift_ref[...], 0.0)   # (H, W*Cin)
    zrow = jnp.zeros((1, L), jnp.float32)
    h_dn = jnp.concatenate([zrow, h[:H - 1, :]], axis=0)   # row r holds h[r-1]
    h_up = jnp.concatenate([h[1:, :], zrow], axis=0)       # row r holds h[r+1]
    acc = (jnp.dot(h_dn, w_ref[0], preferred_element_type=jnp.float32)
           + jnp.dot(h, w_ref[1], preferred_element_type=jnp.float32)
           + jnp.dot(h_up, w_ref[2], preferred_element_type=jnp.float32)
           + brow_ref[...])
    o_ref[0] = acc
    s_ref[0] = jnp.sum(acc, axis=0, keepdims=True)
    q_ref[0] = jnp.sum(acc * acc, axis=0, keepdims=True)


def _bn_relu_kernel(x_ref, scale_ref, shift_ref, o_ref):
    o_ref[...] = jnp.maximum(x_ref[...] * scale_ref[...] + shift_ref[...], 0.0)


# --------------------------------------------------------------------------
# pallas_call wrappers
# --------------------------------------------------------------------------

def upsample_pad(x1_ld, wu, brow_u, diff_h):
    # x1_ld: (N, H1, W1*Cin) -> fully padded lane-dense up tensor (N, Hp, Wp*Cmid).
    N, H1, K = x1_ld.shape
    Lp = wu.shape[2]
    dh_lo = diff_h // 2
    blk = 4 * (H1 * K + 2 * K * Lp + Lp + 2 * H1 * Lp)
    yp = pl.pallas_call(
        _upsample_kernel,
        out_shape=jax.ShapeDtypeStruct((N, 2, H1, Lp), jnp.float32),
        grid=(N,),
        in_specs=[pl.BlockSpec((1, H1, K), lambda n: (n, 0, 0)),
                  pl.BlockSpec((2, K, Lp), lambda n: (0, 0, 0)),
                  pl.BlockSpec((1, Lp), lambda n: (0, 0))],
        out_specs=pl.BlockSpec((1, 2, H1, Lp), lambda n: (n, 0, 0, 0)),
        compiler_params=_params(("parallel",), blk),
        cost_estimate=pl.CostEstimate(
            flops=4 * N * H1 * K * Lp, transcendentals=0,
            bytes_accessed=4 * (N * H1 * K + 2 * K * Lp + Lp + N * 2 * H1 * Lp)),
    )(x1_ld, wu, brow_u)
    # TODO(synk): fold this tiny H-parity interleave + H pad into the output
    # index_map (strided-row stores) instead of XLA glue on the small `up` tensor.
    up = jnp.transpose(yp, (0, 2, 1, 3)).reshape(N, 2 * H1, Lp)
    return jnp.pad(up, ((0, 0), (1 + dh_lo, 1 + diff_h - dh_lo), (0, 0)))


def conv1_fused(x2_pad, up_pad, wa, wb, brow):
    N, Hp, La = x2_pad.shape
    Lb = up_pad.shape[2]
    H = Hp - 2
    Lo = wa.shape[2]
    blk = 4 * (Hp * La + Hp * Lb + 3 * La * Lo + 3 * Lb * Lo + Lo + H * Lo + 2 * Lo)
    return pl.pallas_call(
        _conv1_kernel,
        out_shape=(jax.ShapeDtypeStruct((N, H, Lo), jnp.float32),
                   jax.ShapeDtypeStruct((N, 1, Lo), jnp.float32),
                   jax.ShapeDtypeStruct((N, 1, Lo), jnp.float32)),
        grid=(N,),
        in_specs=[pl.BlockSpec((1, Hp, La), lambda n: (n, 0, 0)),
                  pl.BlockSpec((1, Hp, Lb), lambda n: (n, 0, 0)),
                  pl.BlockSpec((3, La, Lo), lambda n: (0, 0, 0)),
                  pl.BlockSpec((3, Lb, Lo), lambda n: (0, 0, 0)),
                  pl.BlockSpec((1, Lo), lambda n: (0, 0))],
        out_specs=(pl.BlockSpec((1, H, Lo), lambda n: (n, 0, 0)),
                   pl.BlockSpec((1, 1, Lo), lambda n: (n, 0, 0)),
                   pl.BlockSpec((1, 1, Lo), lambda n: (n, 0, 0))),
        compiler_params=_params(("parallel",), blk),
        cost_estimate=pl.CostEstimate(
            flops=2 * N * H * 3 * (La + Lb) * Lo, transcendentals=0,
            bytes_accessed=4 * (N * Hp * (La + Lb) + 3 * (La + Lb) * Lo
                                + N * (H + 2) * Lo)),
    )(x2_pad, up_pad, wa, wb, brow)


def conv2_fused(h1, scale1, shift1, w_band, brow):
    N, H, Li = h1.shape
    Lo = w_band.shape[2]
    blk = 4 * (H * Li + 2 * Li + 3 * Li * Lo + Lo + H * Lo + 2 * Lo)
    return pl.pallas_call(
        _conv2_kernel,
        out_shape=(jax.ShapeDtypeStruct((N, H, Lo), jnp.float32),
                   jax.ShapeDtypeStruct((N, 1, Lo), jnp.float32),
                   jax.ShapeDtypeStruct((N, 1, Lo), jnp.float32)),
        grid=(N,),
        in_specs=[pl.BlockSpec((1, H, Li), lambda n: (n, 0, 0)),
                  pl.BlockSpec((1, Li), lambda n: (0, 0)),
                  pl.BlockSpec((1, Li), lambda n: (0, 0)),
                  pl.BlockSpec((3, Li, Lo), lambda n: (0, 0, 0)),
                  pl.BlockSpec((1, Lo), lambda n: (0, 0))],
        out_specs=(pl.BlockSpec((1, H, Lo), lambda n: (n, 0, 0)),
                   pl.BlockSpec((1, 1, Lo), lambda n: (n, 0, 0)),
                   pl.BlockSpec((1, 1, Lo), lambda n: (n, 0, 0))),
        compiler_params=_params(("parallel",), blk),
        cost_estimate=pl.CostEstimate(
            flops=2 * N * H * 3 * Li * Lo, transcendentals=0,
            bytes_accessed=4 * (N * H * (Li + Lo) + 3 * Li * Lo + 2 * N * Lo)),
    )(h1, scale1, shift1, w_band, brow)


def _pick_row_tile(rows, max_rows=1024):
    if rows <= max_rows:
        return rows
    for tr in range(max_rows - max_rows % 8, 7, -8):
        if rows % tr == 0:
            return tr
    # TODO(synk): pad the row count instead of falling back to one giant block.
    return rows


def batchnorm_relu_apply(x2d, scale_ld, shift_ld):
    rows, lanes = x2d.shape
    tr = _pick_row_tile(rows)
    blk = 4 * (2 * tr * lanes + 2 * lanes)
    return pl.pallas_call(
        _bn_relu_kernel,
        out_shape=jax.ShapeDtypeStruct((rows, lanes), jnp.float32),
        grid=(rows // tr,),
        in_specs=[pl.BlockSpec((tr, lanes), lambda i: (i, 0)),
                  pl.BlockSpec((1, lanes), lambda i: (0, 0)),
                  pl.BlockSpec((1, lanes), lambda i: (0, 0))],
        out_specs=pl.BlockSpec((tr, lanes), lambda i: (i, 0)),
        compiler_params=_params(("parallel",), blk),
        cost_estimate=pl.CostEstimate(flops=2 * rows * lanes, transcendentals=0,
                                      bytes_accessed=8 * rows * lanes),
    )(x2d, scale_ld, shift_ld)


def _bn_scale_shift(s_part, q_part, count, gamma, beta, W):
    # s/q: (N, 1, W*C) per-image partial sums over H -> per-channel scale/shift,
    # re-tiled lane-dense.
    C = gamma.shape[0]
    s = jnp.sum(s_part.reshape(-1, W, C), axis=(0, 1))
    q = jnp.sum(q_part.reshape(-1, W, C), axis=(0, 1))
    mean = s / count
    var = jnp.maximum(q / count - mean * mean, 0.0)       # clamp: avoid rsqrt(neg)
    scale = gamma * jax.lax.rsqrt(var + BN_EPS)
    shift = beta - mean * scale
    return _tile_lanes(scale, W), _tile_lanes(shift, W)


# --------------------------------------------------------------------------
# UNETUp forward (bilinear=False)
# --------------------------------------------------------------------------

def unet_up_forward(params, x1_nchw, x2_nchw):
    x1 = jnp.transpose(x1_nchw, (0, 2, 3, 1)).astype(jnp.float32)     # NHWC
    x2 = jnp.transpose(x2_nchw, (0, 2, 3, 1)).astype(jnp.float32)
    N, H1, W1, Cin1 = x1.shape
    _, H, W, Ca = x2.shape
    Cout = params["c1_w"].shape[0]
    diff_h, diff_w = H - 2 * H1, W - 2 * W1
    if diff_h < 0 or diff_w < 0:
        raise ValueError("x2 spatial dims must be >= 2x upsampled x1 dims")
    Hp, Wp = H + 2, W + 2
    cnt = float(N * H * W)

    # ConvTranspose2d(k=2,s=2): W interleave + diff_w pad + conv pad + bias folded
    # into per-parity matmuls; result comes back already padded for conv1.
    wu, brow_u = _upsample_weight(params["up_w"], params["up_b"], W1, Wp, diff_w // 2)
    up_pad = upsample_pad(x1.reshape(N, H1, W1 * Cin1), wu, brow_u, diff_h)

    # x2 zero-padded, lane-dense (free row-major view after the pad).
    x2_pad = jnp.pad(x2, ((0, 0), (1, 1), (1, 1), (0, 0))).reshape(N, Hp, Wp * Ca)

    # conv1 (+bias, per-image BN1 partial stats).  The channel concat is two banded
    # matmuls summed on-chip; output is unpadded and lane-dense.
    wa = _banded_conv_weight(params["c1_w"][:, :Ca], W, pad_w=1)
    wb = _banded_conv_weight(params["c1_w"][:, Ca:], W, pad_w=1)
    h1, s1, q1 = conv1_fused(x2_pad, up_pad, wa, wb, _tile_lanes(params["c1_b"], W))
    scale1, shift1 = _bn_scale_shift(s1, q1, cnt, params["bn1_g"], params["bn1_b"], W)

    # conv2 with BN1+ReLU fused into the prologue (+bias, per-image BN2 stats).
    wc2 = _banded_conv_weight(params["c2_w"], W, pad_w=0)
    g, s2, q2 = conv2_fused(h1, scale1, shift1, wc2, _tile_lanes(params["c2_b"], W))
    scale2, shift2 = _bn_scale_shift(s2, q2, cnt, params["bn2_g"], params["bn2_b"], W)

    # Final BN2 + ReLU over the lane-dense (N*H, W*Cout) view.
    out2d = batchnorm_relu_apply(g.reshape(N * H, W * Cout), scale2, shift2)
    out = out2d.reshape(N, H, W, Cout)
    return jnp.transpose(out, (0, 3, 1, 2))               # back to NCHW


# --------------------------------------------------------------------------
# Pure-JAX reference (correctness check)
# --------------------------------------------------------------------------

def _ref_conv3x3(x, w_oihw, b):
    w_hwio = jnp.transpose(w_oihw, (2, 3, 1, 0))
    y = jax.lax.conv_general_dilated(
        x, w_hwio, window_strides=(1, 1), padding="SAME",
        dimension_numbers=("NHWC", "HWIO", "NHWC"), precision=_HIGH)
    return y + b.reshape(1, 1, 1, -1)


def _ref_bn_relu(x, g, bta):
    mean = jnp.mean(x, axis=(0, 1, 2), keepdims=True)
    var = jnp.mean((x - mean) ** 2, axis=(0, 1, 2), keepdims=True)
    y = (x - mean) * jax.lax.rsqrt(var + BN_EPS)
    y = y * g.reshape(1, 1, 1, -1) + bta.reshape(1, 1, 1, -1)
    return jnp.maximum(y, 0.0)


def reference_forward(params, x1_nchw, x2_nchw):
    x1 = jnp.transpose(x1_nchw, (0, 2, 3, 1)).astype(jnp.float32)
    x2 = jnp.transpose(x2_nchw, (0, 2, 3, 1)).astype(jnp.float32)
    N, H, W, _ = x1.shape
    Cmid = params["up_w"].shape[1]
    up = jnp.einsum("nhwc,coij->nhiwjo", x1, params["up_w"], precision=_HIGH)
    up = up.reshape(N, 2 * H, 2 * W, Cmid) + params["up_b"].reshape(1, 1, 1, -1)
    diff_h = x2.shape[1] - up.shape[1]
    diff_w = x2.shape[2] - up.shape[2]
    up = jnp.pad(up, ((0, 0),
                      (diff_h // 2, diff_h - diff_h // 2),
                      (diff_w // 2, diff_w - diff_w // 2),
                      (0, 0)))
    x = jnp.concatenate([x2, up], axis=-1)
    h = _ref_bn_relu(_ref_conv3x3(x, params["c1_w"], params["c1_b"]),
                     params["bn1_g"], params["bn1_b"])
    h = _ref_bn_relu(_ref_conv3x3(h, params["c2_w"], params["c2_b"]),
                     params["bn2_g"], params["bn2_b"])
    return jnp.transpose(h, (0, 3, 1, 2))


# --------------------------------------------------------------------------
# main
# --------------------------------------------------------------------------

if __name__ == "__main__":
    in_ch, out_ch = 8, 8           # ConvTranspose: in_ch -> in_ch//2; concat -> in_ch
    N, H1, W1 = 2, 8, 8            # x1 spatial
    H2, W2 = 16, 16                # x2 spatial (= 2*H1 here)

    key = jax.random.PRNGKey(0)
    ks = jax.random.split(key, 8)

    params = {
        # ConvTranspose2d(in_ch, in_ch//2, k=2, s=2): weight (Cin, Cout, 2, 2)
        "up_w": 0.1 * jax.random.normal(ks[0], (in_ch, in_ch // 2, 2, 2), jnp.float32),
        "up_b": 0.1 * jax.random.normal(ks[1], (in_ch // 2,), jnp.float32),
        # Conv2d(in_ch, out_ch, 3, padding=1): weight (Cout, Cin, 3, 3)
        "c1_w": 0.1 * jax.random.normal(ks[2], (out_ch, in_ch, 3, 3), jnp.float32),
        "c1_b": 0.1 * jax.random.normal(ks[3], (out_ch,), jnp.float32),
        # BatchNorm2d defaults: weight=1, bias=0
        "bn1_g": jnp.ones((out_ch,), jnp.float32),
        "bn1_b": jnp.zeros((out_ch,), jnp.float32),
        # Conv2d(out_ch, out_ch, 3, padding=1)
        "c2_w": 0.1 * jax.random.normal(ks[4], (out_ch, out_ch, 3, 3), jnp.float32),
        "c2_b": 0.1 * jax.random.normal(ks[5], (out_ch,), jnp.float32),
        "bn2_g": jnp.ones((out_ch,), jnp.float32),
        "bn2_b": jnp.zeros((out_ch,), jnp.float32),
    }

    x1 = jax.random.normal(ks[6], (N, in_ch, H1, W1), jnp.float32)        # NCHW
    x2 = jax.random.normal(ks[7], (N, in_ch // 2, H2, W2), jnp.float32)   # NCHW

    out = jax.jit(unet_up_forward)(params, x1, x2)
    out = jax.block_until_ready(out)
    assert out.shape == (N, out_ch, H2, W2), out.shape

    ref = jax.block_until_ready(reference_forward(params, x1, x2))
    max_err = float(jnp.max(jnp.abs(out - ref)))
    assert max_err < 2e-2, f"max abs error {max_err}"

    print("KERNEL_OK")
</pallas_src>

<mosaic_0001>
module attributes {stable_mosaic.version = 11 : i64} {
  func.func @_upsample_kernel(%arg0: i32, %arg1: memref<1x8x64xf32, #tpu.memory_space<vmem>>, %arg2: memref<2x64x72xf32, #tpu.memory_space<vmem>>, %arg3: memref<1x72xf32, #tpu.memory_space<vmem>>, %arg4: memref<1x2x8x72xf32, #tpu.memory_space<vmem>>) attributes {dimension_semantics = [#tpu.dimension_semantics<parallel>], iteration_bounds = array<i64: 2>, scalar_prefetch = 0 : i64, scratch_operands = 0 : i64, tpu.core_type = #tpu.core_type<tc>, window_params = [{transform_indices = @transform_0, window_bounds = array<i64: 1, 8, 64>}, {pipeline_mode = #tpu.pipeline_mode<synchronous>, transform_indices = @transform_1, window_bounds = array<i64: 2, 64, 72>}, {pipeline_mode = #tpu.pipeline_mode<synchronous>, transform_indices = @transform_2, window_bounds = array<i64: 1, 72>}, {transform_indices = @transform_3, window_bounds = array<i64: 1, 2, 8, 72>}]} {
    %c0 = arith.constant 0 : index
    %c0_0 = arith.constant 0 : index
    %c0_1 = arith.constant 0 : index
    %0 = vector.load %arg1[%c0, %c0_0, %c0_1] : memref<1x8x64xf32, #tpu.memory_space<vmem>>, vector<1x8x64xf32>
    %1 = vector.shape_cast %0 : vector<1x8x64xf32> to vector<8x64xf32>
    %c0_2 = arith.constant 0 : index
    %c0_3 = arith.constant 0 : index
    %c0_4 = arith.constant 0 : index
    %2 = vector.load %arg2[%c0_2, %c0_3, %c0_4] : memref<2x64x72xf32, #tpu.memory_space<vmem>>, vector<1x64x72xf32>
    %3 = vector.shape_cast %2 : vector<1x64x72xf32> to vector<64x72xf32>
    %cst = arith.constant dense<0.000000e+00> : vector<8x72xf32>
    %4 = tpu.matmul %1, %3, %cst {dimension_numbers = #tpu.dot_dimension_numbers<[1], [0], [0], [1], [0, 0, 1, 1], [], []>} : vector<8x64xf32>, vector<64x72xf32>, vector<8x72xf32> -> vector<8x72xf32>
    %c0_5 = arith.constant 0 : index
    %c0_6 = arith.constant 0 : index
    %5 = vector.load %arg3[%c0_5, %c0_6] : memref<1x72xf32, #tpu.memory_space<vmem>>, vector<1x72xf32>
    %6 = vector.broadcast %5 : vector<1x72xf32> to vector<8x72xf32>
    %7 = arith.addf %4, %6 : vector<8x72xf32>
    %c0_7 = arith.constant 0 : index
    %c0_8 = arith.constant 0 : index
    %c0_9 = arith.constant 0 : index
    %c0_10 = arith.constant 0 : index
    %8 = vector.load %arg4[%c0_7, %c0_8, %c0_9, %c0_10] : memref<1x2x8x72xf32, #tpu.memory_space<vmem>>, vector<1x1x8x72xf32>
    %9 = vector.shape_cast %8 : vector<1x1x8x72xf32> to vector<8x72xf32>
    %10 = vector.shape_cast %7 : vector<8x72xf32> to vector<1x1x8x72xf32>
    tpu.vector_store %arg4[%c0_7, %c0_8, %c0_9, %c0_10], %10 {strides = array<i32>} : memref<1x2x8x72xf32, #tpu.memory_space<vmem>>, vector<1x1x8x72xf32>,
    %c1 = arith.constant 1 : index
    %c0_11 = arith.constant 0 : index
    %c0_12 = arith.constant 0 : index
    %11 = vector.load %arg2[%c1, %c0_11, %c0_12] : memref<2x64x72xf32, #tpu.memory_space<vmem>>, vector<1x64x72xf32>
    %12 = vector.shape_cast %11 : vector<1x64x72xf32> to vector<64x72xf32>
    %cst_13 = arith.constant dense<0.000000e+00> : vector<8x72xf32>
    %13 = tpu.matmul %1, %12, %cst_13 {dimension_numbers = #tpu.dot_dimension_numbers<[1], [0], [0], [1], [0, 0, 1, 1], [], []>} : vector<8x64xf32>, vector<64x72xf32>, vector<8x72xf32> -> vector<8x72xf32>
    %c0_14 = arith.constant 0 : index
    %c0_15 = arith.constant 0 : index
    %14 = vector.load %arg3[%c0_14, %c0_15] : memref<1x72xf32, #tpu.memory_space<vmem>>, vector<1x72xf32>
    %15 = vector.broadcast %14 : vector<1x72xf32> to vector<8x72xf32>
    %16 = arith.addf %13, %15 : vector<8x72xf32>
    %c0_16 = arith.constant 0 : index
    %c1_17 = arith.constant 1 : index
    %c0_18 = arith.constant 0 : index
    %c0_19 = arith.constant 0 : index
    %17 = vector.load %arg4[%c0_16, %c1_17, %c0_18, %c0_19] : memref<1x2x8x72xf32, #tpu.memory_space<vmem>>, vector<1x1x8x72xf32>
    %18 = vector.shape_cast %17 : vector<1x1x8x72xf32> to vector<8x72xf32>
    %19 = vector.shape_cast %16 : vector<8x72xf32> to vector<1x1x8x72xf32>
    tpu.vector_store %arg4[%c0_16, %c1_17, %c0_18, %c0_19], %19 {strides = array<i32>} : memref<1x2x8x72xf32, #tpu.memory_space<vmem>>, vector<1x1x8x72xf32>,
    return
  }
  func.func @transform_0(%arg0: i32) -> (i32, i32, i32) {
    %c0_i32 = arith.constant 0 : i32
    %c0_i32_0 = arith.constant 0 : i32
    %c0_i32_1 = arith.constant 0 : i32
    return %arg0, %c0_i32, %c0_i32_0 : i32, i32, i32
  }
  func.func @transform_1(%arg0: i32) -> (i32, i32, i32) {
    %c0_i32 = arith.constant 0 : i32
    %c0_i32_0 = arith.constant 0 : i32
    %c0_i32_1 = arith.constant 0 : i32
    %c0_i32_2 = arith.constant 0 : i32
    return %c0_i32, %c0_i32_0, %c0_i32_1 : i32, i32, i32
  }
  func.func @transform_2(%arg0: i32) -> (i32, i32) {
    %c0_i32 = arith.constant 0 : i32
    %c0_i32_0 = arith.constant 0 : i32
    %c0_i32_1 = arith.constant 0 : i32
    return %c0_i32, %c0_i32_0 : i32, i32
  }
  func.func @transform_3(%arg0: i32) -> (i32, i32, i32, i32) {
    %c0_i32 = arith.constant 0 : i32
    %c0_i32_0 = arith.constant 0 : i32
    %c0_i32_1 = arith.constant 0 : i32
    %c0_i32_2 = arith.constant 0 : i32
    return %arg0, %c0_i32, %c0_i32_0, %c0_i32_1 : i32, i32, i32, i32
  }
}

module attributes {stable_mosaic.version = 11 : i64} {
  func.func @_conv1_kernel(%arg0: i32, %arg1: memref<1x18x72xf32, #tpu.memory_space<vmem>>, %arg2: memref<1x18x72xf32, #tpu.memory_space<vmem>>, %arg3: memref<3x72x128xf32, #tpu.memory_space<vmem>>, %arg4: memref<3x72x128xf32, #tpu.memory_space<vmem>>, %arg5: memref<1x128xf32, #tpu.memory_space<vmem>>, %arg6: memref<1x16x128xf32, #tpu.memory_space<vmem>>, %arg7: memref<1x1x128xf32, #tpu.memory_space<vmem>>, %arg8: memref<1x1x128xf32, #tpu.memory_space<vmem>>) attributes {dimension_semantics = [#tpu.dimension_semantics<parallel>], iteration_bounds = array<i64: 2>, scalar_prefetch = 0 : i64, scratch_operands = 0 : i64, tpu.core_type = #tpu.core_type<tc>, window_params = [{transform_indices = @transform_0, window_bounds = array<i64: 1, 18, 72>}, {transform_indices = @transform_1, window_bounds = array<i64: 1, 18, 72>}, {pipeline_mode = #tpu.pipeline_mode<synchronous>, transform_indices = @transform_2, window_bounds = array<i64: 3, 72, 128>}, {pipeline_mode = #tpu.pipeline_mode<synchronous>, transform_indices = @transform_3, window_bounds = array<i64: 3, 72, 128>}, {pipeline_mode = #tpu.pipeline_mode<synchronous>, transform_indices = @transform_4, window_bounds = array<i64: 1, 128>}, {transform_indices = @transform_5, window_bounds = array<i64: 1, 16, 128>}, {transform_indices = @transform_6, window_bounds = array<i64: 1, 1, 128>}, {transform_indices = @transform_7, window_bounds = array<i64: 1, 1, 128>}]} {
    %c0 = arith.constant 0 : index
    %c0_0 = arith.constant 0 : index
    %c0_1 = arith.constant 0 : index
    %0 = vector.load %arg1[%c0, %c0_0, %c0_1] : memref<1x18x72xf32, #tpu.memory_space<vmem>>, vector<1x18x72xf32>
    %1 = vector.shape_cast %0 : vector<1x18x72xf32> to vector<18x72xf32>
    %c0_2 = arith.constant 0 : index
    %c0_3 = arith.constant 0 : index
    %c0_4 = arith.constant 0 : index
    %2 = vector.load %arg2[%c0_2, %c0_3, %c0_4] : memref<1x18x72xf32, #tpu.memory_space<vmem>>, vector<1x18x72xf32>
    %3 = vector.shape_cast %2 : vector<1x18x72xf32> to vector<18x72xf32>
    %cst = arith.constant 0.000000e+00 : f32
    %4 = vector.broadcast %cst : f32 to vector<16x128xf32>
    %5 = vector.extract_strided_slice %1 {offsets = [0, 0], sizes = [16, 72], strides = [1, 1]} : vector<18x72xf32> to vector<16x72xf32>
    %c0_5 = arith.constant 0 : index
    %c0_6 = arith.constant 0 : index
    %c0_7 = arith.constant 0 : index
    %6 = vector.load %arg3[%c0_5, %c0_6, %c0_7] : memref<3x72x128xf32, #tpu.memory_space<vmem>>, vector<1x72x128xf32>
    %7 = vector.shape_cast %6 : vector<1x72x128xf32> to vector<72x128xf32>
    %cst_8 = arith.constant dense<0.000000e+00> : vector<16x128xf32>
    %8 = tpu.matmul %5, %7, %cst_8 {dimension_numbers = #tpu.dot_dimension_numbers<[1], [0], [0], [1], [0, 0, 1, 1], [], []>} : vector<16x72xf32>, vector<72x128xf32>, vector<16x128xf32> -> vector<16x128xf32>
    %9 = arith.addf %4, %8 : vector<16x128xf32>
    %10 = vector.extract_strided_slice %3 {offsets = [0, 0], sizes = [16, 72], strides = [1, 1]} : vector<18x72xf32> to vector<16x72xf32>
    %c0_9 = arith.constant 0 : index
    %c0_10 = arith.constant 0 : index
    %c0_11 = arith.constant 0 : index
    %11 = vector.load %arg4[%c0_9, %c0_10, %c0_11] : memref<3x72x128xf32, #tpu.memory_space<vmem>>, vector<1x72x128xf32>
    %12 = vector.shape_cast %11 : vector<1x72x128xf32> to vector<72x128xf32>
    %cst_12 = arith.constant dense<0.000000e+00> : vector<16x128xf32>
    %13 = tpu.matmul %10, %12, %cst_12 {dimension_numbers = #tpu.dot_dimension_numbers<[1], [0], [0], [1], [0, 0, 1, 1], [], []>} : vector<16x72xf32>, vector<72x128xf32>, vector<16x128xf32> -> vector<16x128xf32>
    %14 = arith.addf %9, %13 : vector<16x128xf32>
    %15 = vector.extract_strided_slice %1 {offsets = [1, 0], sizes = [16, 72], strides = [1, 1]} : vector<18x72xf32> to vector<16x72xf32>
    %c1 = arith.constant 1 : index
    %c0_13 = arith.constant 0 : index
    %c0_14 = arith.constant 0 : index
    %16 = vector.load %arg3[%c1, %c0_13, %c0_14] : memref<3x72x128xf32, #tpu.memory_space<vmem>>, vector<1x72x128xf32>
    %17 = vector.shape_cast %16 : vector<1x72x128xf32> to vector<72x128xf32>
    %cst_15 = arith.constant dense<0.000000e+00> : vector<16x128xf32>
    %18 = tpu.matmul %15, %17, %cst_15 {dimension_numbers = #tpu.dot_dimension_numbers<[1], [0], [0], [1], [0, 0, 1, 1], [], []>} : vector<16x72xf32>, vector<72x128xf32>, vector<16x128xf32> -> vector<16x128xf32>
    %19 = arith.addf %14, %18 : vector<16x128xf32>
    %20 = vector.extract_strided_slice %3 {offsets = [1, 0], sizes = [16, 72], strides = [1, 1]} : vector<18x72xf32> to vector<16x72xf32>
    %c1_16 = arith.constant 1 : index
    %c0_17 = arith.constant 0 : index
    %c0_18 = arith.constant 0 : index
    %21 = vector.load %arg4[%c1_16, %c0_17, %c0_18] : memref<3x72x128xf32, #tpu.memory_space<vmem>>, vector<1x72x128xf32>
    %22 = vector.shape_cast %21 : vector<1x72x128xf32> to vector<72x128xf32>
    %cst_19 = arith.constant dense<0.000000e+00> : vector<16x128xf32>
    %23 = tpu.matmul %20, %22, %cst_19 {dimension_numbers = #tpu.dot_dimension_numbers<[1], [0], [0], [1], [0, 0, 1, 1], [], []>} : vector<16x72xf32>, vector<72x128xf32>, vector<16x128xf32> -> vector<16x128xf32>
    %24 = arith.addf %19, %23 : vector<16x128xf32>
    %25 = vector.extract_strided_slice %1 {offsets = [2, 0], sizes = [16, 72], strides = [1, 1]} : vector<18x72xf32> to vector<16x72xf32>
    %c2 = arith.constant 2 : index
    %c0_20 = arith.constant 0 : index
    %c0_21 = arith.constant 0 : index
    %26 = vector.load %arg3[%c2, %c0_20, %c0_21] : memref<3x72x128xf32, #tpu.memory_space<vmem>>, vector<1x72x128xf32>
    %27 = vector.shape_cast %26 : vector<1x72x128xf32> to vector<72x128xf32>
    %cst_22 = arith.constant dense<0.000000e+00> : vector<16x128xf32>
    %28 = tpu.matmul %25, %27, %cst_22 {dimension_numbers = #tpu.dot_dimension_numbers<[1], [0], [0], [1], [0, 0, 1, 1], [], []>} : vector<16x72xf32>, vector<72x128xf32>, vector<16x128xf32> -> vector<16x128xf32>
    %29 = arith.addf %24, %28 : vector<16x128xf32>
    %30 = vector.extract_strided_slice %3 {offsets = [2, 0], sizes = [16, 72], strides = [1, 1]} : vector<18x72xf32> to vector<16x72xf32>
    %c2_23 = arith.constant 2 : index
    %c0_24 = arith.constant 0 : index
    %c0_25 = arith.constant 0 : index
    %31 = vector.load %arg4[%c2_23, %c0_24, %c0_25] : memref<3x72x128xf32, #tpu.memory_space<vmem>>, vector<1x72x128xf32>
    %32 = vector.shape_cast %31 : vector<1x72x128xf32> to vector<72x128xf32>
    %cst_26 = arith.constant dense<0.000000e+00> : vector<16x128xf32>
    %33 = tpu.matmul %30, %32, %cst_26 {dimension_numbers = #tpu.dot_dimension_numbers<[1], [0], [0], [1], [0, 0, 1, 1], [], []>} : vector<16x72xf32>, vector<72x128xf32>, vector<16x128xf32> -> vector<16x128xf32>
    %34 = arith.addf %29, %33 : vector<16x128xf32>
    %c0_27 = arith.constant 0 : index
    %c0_28 = arith.constant 0 : index
    %35 = vector.load %arg5[%c0_27, %c0_28] : memref<1x128xf32, #tpu.memory_space<vmem>>, vector<1x128xf32>
    %36 = vector.broadcast %35 : vector<1x128xf32> to vector<16x128xf32>
    %37 = arith.addf %34, %36 : vector<16x128xf32>
    %c0_29 = arith.constant 0 : index
    %c0_30 = arith.constant 0 : index
    %c0_31 = arith.constant 0 : index
    %38 = vector.load %arg6[%c0_29, %c0_30, %c0_31] : memref<1x16x128xf32, #tpu.memory_space<vmem>>, vector<1x16x128xf32>
    %39 = vector.shape_cast %38 : vector<1x16x128xf32> to vector<16x128xf32>
    %40 = vector.shape_cast %37 : vector<16x128xf32> to vector<1x16x128xf32>
    tpu.vector_store %arg6[%c0_29, %c0_30, %c0_31], %40 {strides = array<i32>} : memref<1x16x128xf32, #tpu.memory_space<vmem>>, vector<1x16x128xf32>,
    %cst_32 = arith.constant dense<0.000000e+00> : vector<128xf32>
    %41 = vector.multi_reduction <add>, %37, %cst_32 [0] : vector<16x128xf32> to vector<128xf32>
    %42 = vector.shape_cast %41 : vector<128xf32> to vector<1x128xf32>
    %c0_33 = arith.constant 0 : index
    %c0_34 = arith.constant 0 : index
    %c0_35 = arith.constant 0 : index
    %43 = vector.load %arg7[%c0_33, %c0_34, %c0_35] : memref<1x1x128xf32, #tpu.memory_space<vmem>>, vector<1x1x128xf32>
    %44 = vector.shape_cast %43 : vector<1x1x128xf32> to vector<1x128xf32>
    %45 = vector.shape_cast %42 : vector<1x128xf32> to vector<1x1x128xf32>
    tpu.vector_store %arg7[%c0_33, %c0_34, %c0_35], %45 {strides = array<i32>} : memref<1x1x128xf32, #tpu.memory_space<vmem>>, vector<1x1x128xf32>,
    %46 = arith.mulf %37, %37 : vector<16x128xf32>
    %cst_36 = arith.constant dense<0.000000e+00> : vector<128xf32>
    %47 = vector.multi_reduction <add>, %46, %cst_36 [0] : vector<16x128xf32> to vector<128xf32>
    %48 = vector.shape_cast %47 : vector<128xf32> to vector<1x128xf32>
    %c0_37 = arith.constant 0 : index
    %c0_38 = arith.constant 0 : index
    %c0_39 = arith.constant 0 : index
    %49 = vector.load %arg8[%c0_37, %c0_38, %c0_39] : memref<1x1x128xf32, #tpu.memory_space<vmem>>, vector<1x1x128xf32>
    %50 = vector.shape_cast %49 : vector<1x1x128xf32> to vector<1x128xf32>
    %51 = vector.shape_cast %48 : vector<1x128xf32> to vector<1x1x128xf32>
    tpu.vector_store %arg8[%c0_37, %c0_38, %c0_39], %51 {strides = array<i32>} : memref<1x1x128xf32, #tpu.memory_space<vmem>>, vector<1x1x128xf32>,
    return
  }
  func.func @transform_0(%arg0: i32) -> (i32, i32, i32) {
    %c0_i32 = arith.constant 0 : i32
    %c0_i32_0 = arith.constant 0 : i32
    %c0_i32_1 = arith.constant 0 : i32
    return %arg0, %c0_i32, %c0_i32_0 : i32, i32, i32
  }
  func.func @transform_1(%arg0: i32) -> (i32, i32, i32) {
    %c0_i32 = arith.constant 0 : i32
    %c0_i32_0 = arith.constant 0 : i32
    %c0_i32_1 = arith.constant 0 : i32
    return %arg0, %c0_i32, %c0_i32_0 : i32, i32, i32
  }
  func.func @transform_2(%arg0: i32) -> (i32, i32, i32) {
    %c0_i32 = arith.constant 0 : i32
    %c0_i32_0 = arith.constant 0 : i32
    %c0_i32_1 = arith.constant 0 : i32
    %c0_i32_2 = arith.constant 0 : i32
    return %c0_i32, %c0_i32_0, %c0_i32_1 : i32, i32, i32
  }
  func.func @transform_3(%arg0: i32) -> (i32, i32, i32) {
    %c0_i32 = arith.constant 0 : i32
    %c0_i32_0 = arith.constant 0 : i32
    %c0_i32_1 = arith.constant 0 : i32
    %c0_i32_2 = arith.constant 0 : i32
    return %c0_i32, %c0_i32_0, %c0_i32_1 : i32, i32, i32
  }
  func.func @transform_4(%arg0: i32) -> (i32, i32) {
    %c0_i32 = arith.constant 0 : i32
    %c0_i32_0 = arith.constant 0 : i32
    %c0_i32_1 = arith.constant 0 : i32
    return %c0_i32, %c0_i32_0 : i32, i32
  }
  func.func @transform_5(%arg0: i32) -> (i32, i32, i32) {
    %c0_i32 = arith.constant 0 : i32
    %c0_i32_0 = arith.constant 0 : i32
    %c0_i32_1 = arith.constant 0 : i32
    return %arg0, %c0_i32, %c0_i32_0 : i32, i32, i32
  }
  func.func @transform_6(%arg0: i32) -> (i32, i32, i32) {
    %c0_i32 = arith.constant 0 : i32
    %c0_i32_0 = arith.constant 0 : i32
    %c0_i32_1 = arith.constant 0 : i32
    return %arg0, %c0_i32, %c0_i32_0 : i32, i32, i32
  }
  func.func @transform_7(%arg0: i32) -> (i32, i32, i32) {
    %c0_i32 = arith.constant 0 : i32
    %c0_i32_0 = arith.constant 0 : i32
    %c0_i32_1 = arith.constant 0 : i32
    return %arg0, %c0_i32, %c0_i32_0 : i32, i32, i32
  }
}

module attributes {stable_mosaic.version = 11 : i64} {
  func.func @_conv2_kernel(%arg0: i32, %arg1: memref<1x16x128xf32, #tpu.memory_space<vmem>>, %arg2: memref<1x128xf32, #tpu.memory_space<vmem>>, %arg3: memref<1x128xf32, #tpu.memory_space<vmem>>, %arg4: memref<3x128x128xf32, #tpu.memory_space<vmem>>, %arg5: memref<1x128xf32, #tpu.memory_space<vmem>>, %arg6: memref<1x16x128xf32, #tpu.memory_space<vmem>>, %arg7: memref<1x1x128xf32, #tpu.memory_space<vmem>>, %arg8: memref<1x1x128xf32, #tpu.memory_space<vmem>>) attributes {dimension_semantics = [#tpu.dimension_semantics<parallel>], iteration_bounds = array<i64: 2>, scalar_prefetch = 0 : i64, scratch_operands = 0 : i64, tpu.core_type = #tpu.core_type<tc>, window_params = [{transform_indices = @transform_0, window_bounds = array<i64: 1, 16, 128>}, {pipeline_mode = #tpu.pipeline_mode<synchronous>, transform_indices = @transform_1, window_bounds = array<i64: 1, 128>}, {pipeline_mode = #tpu.pipeline_mode<synchronous>, transform_indices = @transform_2, window_bounds = array<i64: 1, 128>}, {pipeline_mode = #tpu.pipeline_mode<synchronous>, transform_indices = @transform_3, window_bounds = array<i64: 3, 128, 128>}, {pipeline_mode = #tpu.pipeline_mode<synchronous>, transform_indices = @transform_4, window_bounds = array<i64: 1, 128>}, {transform_indices = @transform_5, window_bounds = array<i64: 1, 16, 128>}, {transform_indices = @transform_6, window_bounds = array<i64: 1, 1, 128>}, {transform_indices = @transform_7, window_bounds = array<i64: 1, 1, 128>}]} {
    %c0 = arith.constant 0 : index
    %c0_0 = arith.constant 0 : index
    %c0_1 = arith.constant 0 : index
    %0 = vector.load %arg1[%c0, %c0_0, %c0_1] : memref<1x16x128xf32, #tpu.memory_space<vmem>>, vector<1x16x128xf32>
    %1 = vector.shape_cast %0 : vector<1x16x128xf32> to vector<16x128xf32>
    %c0_2 = arith.constant 0 : index
    %c0_3 = arith.constant 0 : index
    %2 = vector.load %arg2[%c0_2, %c0_3] : memref<1x128xf32, #tpu.memory_space<vmem>>, vector<1x128xf32>
    %3 = vector.broadcast %2 : vector<1x128xf32> to vector<16x128xf32>
    %4 = arith.mulf %1, %3 : vector<16x128xf32>
    %c0_4 = arith.constant 0 : index
    %c0_5 = arith.constant 0 : index
    %5 = vector.load %arg3[%c0_4, %c0_5] : memref<1x128xf32, #tpu.memory_space<vmem>>, vector<1x128xf32>
    %6 = vector.broadcast %5 : vector<1x128xf32> to vector<16x128xf32>
    %7 = arith.addf %4, %6 : vector<16x128xf32>
    %cst = arith.constant 0.000000e+00 : f32
    %8 = vector.broadcast %cst : f32 to vector<16x128xf32>
    %9 = arith.maximumf %7, %8 : vector<16x128xf32>
    %cst_6 = arith.constant 0.000000e+00 : f32
    %10 = vector.broadcast %cst_6 : f32 to vector<1x128xf32>
    %11 = vector.extract_strided_slice %9 {offsets = [0, 0], sizes = [15, 128], strides = [1, 1]} : vector<16x128xf32> to vector<15x128xf32>
    %12 = tpu.concatenate %10, %11 in 0 : vector<1x128xf32>, vector<15x128xf32> -> vector<16x128xf32>
    %13 = vector.extract_strided_slice %9 {offsets = [1, 0], sizes = [15, 128], strides = [1, 1]} : vector<16x128xf32> to vector<15x128xf32>
    %14 = tpu.concatenate %13, %10 in 0 : vector<15x128xf32>, vector<1x128xf32> -> vector<16x128xf32>
    %c0_7 = arith.constant 0 : index
    %c0_8 = arith.constant 0 : index
    %c0_9 = arith.constant 0 : index
    %15 = vector.load %arg4[%c0_7, %c0_8, %c0_9] : memref<3x128x128xf32, #tpu.memory_space<vmem>>, vector<1x128x128xf32>
    %16 = vector.shape_cast %15 : vector<1x128x128xf32> to vector<128x128xf32>
    %cst_10 = arith.constant dense<0.000000e+00> : vector<16x128xf32>
    %17 = tpu.matmul %12, %16, %cst_10 {dimension_numbers = #tpu.dot_dimension_numbers<[1], [0], [0], [1], [0, 0, 1, 1], [], []>} : vector<16x128xf32>, vector<128x128xf32>, vector<16x128xf32> -> vector<16x128xf32>
    %c1 = arith.constant 1 : index
    %c0_11 = arith.constant 0 : index
    %c0_12 = arith.constant 0 : index
    %18 = vector.load %arg4[%c1, %c0_11, %c0_12] : memref<3x128x128xf32, #tpu.memory_space<vmem>>, vector<1x128x128xf32>
    %19 = vector.shape_cast %18 : vector<1x128x128xf32> to vector<128x128xf32>
    %cst_13 = arith.constant dense<0.000000e+00> : vector<16x128xf32>
    %20 = tpu.matmul %9, %19, %cst_13 {dimension_numbers = #tpu.dot_dimension_numbers<[1], [0], [0], [1], [0, 0, 1, 1], [], []>} : vector<16x128xf32>, vector<128x128xf32>, vector<16x128xf32> -> vector<16x128xf32>
    %21 = arith.addf %17, %20 : vector<16x128xf32>
    %c2 = arith.constant 2 : index
    %c0_14 = arith.constant 0 : index
    %c0_15 = arith.constant 0 : index
    %22 = vector.load %arg4[%c2, %c0_14, %c0_15] : memref<3x128x128xf32, #tpu.memory_space<vmem>>, vector<1x128x128xf32>
    %23 = vector.shape_cast %22 : vector<1x128x128xf32> to vector<128x128xf32>
    %cst_16 = arith.constant dense<0.000000e+00> : vector<16x128xf32>
    %24 = tpu.matmul %14, %23, %cst_16 {dimension_numbers = #tpu.dot_dimension_numbers<[1], [0], [0], [1], [0, 0, 1, 1], [], []>} : vector<16x128xf32>, vector<128x128xf32>, vector<16x128xf32> -> vector<16x128xf32>
    %25 = arith.addf %21, %24 : vector<16x128xf32>
    %c0_17 = arith.constant 0 : index
    %c0_18 = arith.constant 0 : index
    %26 = vector.load %arg5[%c0_17, %c0_18] : memref<1x128xf32, #tpu.memory_space<vmem>>, vector<1x128xf32>
    %27 = vector.broadcast %26 : vector<1x128xf32> to vector<16x128xf32>
    %28 = arith.addf %25, %27 : vector<16x128xf32>
    %c0_19 = arith.constant 0 : index
    %c0_20 = arith.constant 0 : index
    %c0_21 = arith.constant 0 : index
    %29 = vector.load %arg6[%c0_19, %c0_20, %c0_21] : memref<1x16x128xf32, #tpu.memory_space<vmem>>, vector<1x16x128xf32>
    %30 = vector.shape_cast %29 : vector<1x16x128xf32> to vector<16x128xf32>
    %31 = vector.shape_cast %28 : vector<16x128xf32> to vector<1x16x128xf32>
    tpu.vector_store %arg6[%c0_19, %c0_20, %c0_21], %31 {strides = array<i32>} : memref<1x16x128xf32, #tpu.memory_space<vmem>>, vector<1x16x128xf32>,
    %cst_22 = arith.constant dense<0.000000e+00> : vector<128xf32>
    %32 = vector.multi_reduction <add>, %28, %cst_22 [0] : vector<16x128xf32> to vector<128xf32>
    %33 = vector.shape_cast %32 : vector<128xf32> to vector<1x128xf32>
    %c0_23 = arith.constant 0 : index
    %c0_24 = arith.constant 0 : index
    %c0_25 = arith.constant 0 : index
    %34 = vector.load %arg7[%c0_23, %c0_24, %c0_25] : memref<1x1x128xf32, #tpu.memory_space<vmem>>, vector<1x1x128xf32>
    %35 = vector.shape_cast %34 : vector<1x1x128xf32> to vector<1x128xf32>
    %36 = vector.shape_cast %33 : vector<1x128xf32> to vector<1x1x128xf32>
    tpu.vector_store %arg7[%c0_23, %c0_24, %c0_25], %36 {strides = array<i32>} : memref<1x1x128xf32, #tpu.memory_space<vmem>>, vector<1x1x128xf32>,
    %37 = arith.mulf %28, %28 : vector<16x128xf32>
    %cst_26 = arith.constant dense<0.000000e+00> : vector<128xf32>
    %38 = vector.multi_reduction <add>, %37, %cst_26 [0] : vector<16x128xf32> to vector<128xf32>
    %39 = vector.shape_cast %38 : vector<128xf32> to vector<1x128xf32>
    %c0_27 = arith.constant 0 : index
    %c0_28 = arith.constant 0 : index
    %c0_29 = arith.constant 0 : index
    %40 = vector.load %arg8[%c0_27, %c0_28, %c0_29] : memref<1x1x128xf32, #tpu.memory_space<vmem>>, vector<1x1x128xf32>
    %41 = vector.shape_cast %40 : vector<1x1x128xf32> to vector<1x128xf32>
    %42 = vector.shape_cast %39 : vector<1x128xf32> to vector<1x1x128xf32>
    tpu.vector_store %arg8[%c0_27, %c0_28, %c0_29], %42 {strides = array<i32>} : memref<1x1x128xf32, #tpu.memory_space<vmem>>, vector<1x1x128xf32>,
    return
  }
  func.func @transform_0(%arg0: i32) -> (i32, i32, i32) {
    %c0_i32 = arith.constant 0 : i32
    %c0_i32_0 = arith.constant 0 : i32
    %c0_i32_1 = arith.constant 0 : i32
    return %arg0, %c0_i32, %c0_i32_0 : i32, i32, i32
  }
  func.func @transform_1(%arg0: i32) -> (i32, i32) {
    %c0_i32 = arith.constant 0 : i32
    %c0_i32_0 = arith.constant 0 : i32
    %c0_i32_1 = arith.constant 0 : i32
    return %c0_i32, %c0_i32_0 : i32, i32
  }
  func.func @transform_2(%arg0: i32) -> (i32, i32) {
    %c0_i32 = arith.constant 0 : i32
    %c0_i32_0 = arith.constant 0 : i32
    %c0_i32_1 = arith.constant 0 : i32
    return %c0_i32, %c0_i32_0 : i32, i32
  }
  func.func @transform_3(%arg0: i32) -> (i32, i32, i32) {
    %c0_i32 = arith.constant 0 : i32
    %c0_i32_0 = arith.constant 0 : i32
    %c0_i32_1 = arith.constant 0 : i32
    %c0_i32_2 = arith.constant 0 : i32
    return %c0_i32, %c0_i32_0, %c0_i32_1 : i32, i32, i32
  }
  func.func @transform_4(%arg0: i32) -> (i32, i32) {
    %c0_i32 = arith.constant 0 : i32
    %c0_i32_0 = arith.constant 0 : i32
    %c0_i32_1 = arith.constant 0 : i32
    return %c0_i32, %c0_i32_0 : i32, i32
  }
  func.func @transform_5(%arg0: i32) -> (i32, i32, i32) {
    %c0_i32 = arith.constant 0 : i32
    %c0_i32_0 = arith.constant 0 : i32
    %c0_i32_1 = arith.constant 0 : i32
    return %arg0, %c0_i32, %c0_i32_0 : i32, i32, i32
  }
  func.func @transform_6(%arg0: i32) -> (i32, i32, i32) {
    %c0_i32 = arith.constant 0 : i32
    %c0_i32_0 = arith.constant 0 : i32
    %c0_i32_1 = arith.constant 0 : i32
    return %arg0, %c0_i32, %c0_i32_0 : i32, i32, i32
  }
  func.func @transform_7(%arg0: i32) -> (i32, i32, i32) {
    %c0_i32 = arith.constant 0 : i32
    %c0_i32_0 = arith.constant 0 : i32
    %c0_i32_1 = arith.constant 0 : i32
    return %arg0, %c0_i32, %c0_i32_0 : i32, i32, i32
  }
}

module attributes {stable_mosaic.version = 11 : i64} {
  func.func @_bn_relu_kernel(%arg0: i32, %arg1: memref<32x128xf32, #tpu.memory_space<vmem>>, %arg2: memref<1x128xf32, #tpu.memory_space<vmem>>, %arg3: memref<1x128xf32, #tpu.memory_space<vmem>>, %arg4: memref<32x128xf32, #tpu.memory_space<vmem>>) attributes {dimension_semantics = [#tpu.dimension_semantics<parallel>], iteration_bounds = array<i64: 1>, scalar_prefetch = 0 : i64, scratch_operands = 0 : i64, tpu.core_type = #tpu.core_type<tc>, window_params = [{transform_indices = @transform_0, window_bounds = array<i64: 32, 128>}, {pipeline_mode = #tpu.pipeline_mode<synchronous>, transform_indices = @transform_1, window_bounds = array<i64: 1, 128>}, {pipeline_mode = #tpu.pipeline_mode<synchronous>, transform_indices = @transform_2, window_bounds = array<i64: 1, 128>}, {transform_indices = @transform_3, window_bounds = array<i64: 32, 128>}]} {
    %c0 = arith.constant 0 : index
    %c0_0 = arith.constant 0 : index
    %0 = vector.load %arg1[%c0, %c0_0] : memref<32x128xf32, #tpu.memory_space<vmem>>, vector<32x128xf32>
    %c0_1 = arith.constant 0 : index
    %c0_2 = arith.constant 0 : index
    %1 = vector.load %arg2[%c0_1, %c0_2] : memref<1x128xf32, #tpu.memory_space<vmem>>, vector<1x128xf32>
    %2 = vector.broadcast %1 : vector<1x128xf32> to vector<32x128xf32>
    %3 = arith.mulf %0, %2 : vector<32x128xf32>
    %c0_3 = arith.constant 0 : index
    %c0_4 = arith.constant 0 : index
    %4 = vector.load %arg3[%c0_3, %c0_4] : memref<1x128xf32, #tpu.memory_space<vmem>>, vector<1x128xf32>
    %5 = vector.broadcast %4 : vector<1x128xf32> to vector<32x128xf32>
    %6 = arith.addf %3, %5 : vector<32x128xf32>
    %cst = arith.constant 0.000000e+00 : f32
    %7 = vector.broadcast %cst : f32 to vector<32x128xf32>
    %8 = arith.maximumf %6, %7 : vector<32x128xf32>
    %c0_5 = arith.constant 0 : index
    %c0_6 = arith.constant 0 : index
    %9 = vector.load %arg4[%c0_5, %c0_6] : memref<32x128xf32, #tpu.memory_space<vmem>>, vector<32x128xf32>
    tpu.vector_store %arg4[%c0_5, %c0_6], %8 {strides = array<i32>} : memref<32x128xf32, #tpu.memory_space<vmem>>, vector<32x128xf32>,
    return
  }
  func.func @transform_0(%arg0: i32) -> (i32, i32) {
    %c0_i32 = arith.constant 0 : i32
    %c0_i32_0 = arith.constant 0 : i32
    return %arg0, %c0_i32 : i32, i32
  }
  func.func @transform_1(%arg0: i32) -> (i32, i32) {
    %c0_i32 = arith.constant 0 : i32
    %c0_i32_0 = arith.constant 0 : i32
    %c0_i32_1 = arith.constant 0 : i32
    return %c0_i32, %c0_i32_0 : i32, i32
  }
  func.func @transform_2(%arg0: i32) -> (i32, i32) {
    %c0_i32 = arith.constant 0 : i32
    %c0_i32_0 = arith.constant 0 : i32
    %c0_i32_1 = arith.constant 0 : i32
    return %c0_i32, %c0_i32_0 : i32, i32
  }
  func.func @transform_3(%arg0: i32) -> (i32, i32) {
    %c0_i32 = arith.constant 0 : i32
    %c0_i32_0 = arith.constant 0 : i32
    return %arg0, %c0_i32 : i32, i32
  }
}

</mosaic_0001>

<bundles_post_ra>
// kernel: unet_up_forward.4
= control target key start
LH: loop header
LB: loop body
LE: loop exit
PB: predicated region body
PF: predicated region fallthrough
CT: control target
= control target key end

     0   :  { %s549_s12 = smov 0   ;;  %s627_s0 = inlined_call_operand.vmem [shape: f32[2,8,64], index: 0, kind: input, shape index: {}]   ;;  %s628_s1 = inlined_call_operand.vmem [shape: f32[2,64,72], index: 1, kind: input, shape index: {}]   ;;  %s629_s2 = inlined_call_operand.vmem [shape: f32[1,72], index: 2, kind: input, shape index: {}]   ;;  %s630_s3 = inlined_call_operand.vmem [shape: f32[2,2,8,72], index: 3, kind: output, shape index: {}]  }
   0x1 LB: > { %s403_s13 = sadd.s32 4294967295, %s524_s12   ;;  %p407_p0 = scmp.ge.s32.totalorder %s524_s12, 1  ;;  %s524_s12 = sphi %s549_s12, %s13_s12  }
   0x2   : > { %p136_p1 = scmp.lt.s32.totalorder %s524_s12, 3 }
   0x4   : > { %p137_p2 = pnand %p407_p0, %p136_p1 }
   0x5   : > { %v169_v0 = vld [vmem:[%s628_s1] sm:$0xff] (!%p137_p2)  ;;  %v170_v1 = vld [vmem:[%s628_s1 + $0x8] sm:$0xff] (!%p137_p2)  ;;  %v526_v3 = vmov (!%p137_p2), 0.0|0.0   ;;  %v171_v6 = vld [vmem:[%s628_s1 + $0x10] sm:$0xff] (!%p137_p2)  ;;  %p577_p3 = scmp.lt.s32.totalorder (!%p137_p2), %s403_s13, 1  ;;  %vm527_vm0 = vmmov (!%p137_p2), 0  }
   0x6   : > { %140 = sbr.rel (%p137_p2) target bundleno = 239 (0xef), region = 32  ;;  %v413_v2 = vld [vmem:[%s628_s1 + $0x40] sm:$0xff] (!%p137_p2)  ;;  %483 = vmatprep.subr.bf16.mxu0 (!%p137_p2), %v526_v3  ;;  %495 = vmatprep.subr.bf16.mxu1 (!%p137_p2), %v526_v3  ;;  %v484_v4 = vpack.c.bf16 (!%p137_p2), %v170_v1, %v169_v0  ;;  %v414_v5 = vld [vmem:[%s628_s1 + $0x48] sm:$0xff] (!%p137_p2)  ;;  %v172_v7 = vld [vmem:[%s628_s1 + $0x18] sm:$0xff] (!%p137_p2)  ;;  %v528_v11 = vmov (!%p137_p2), 0.0   ;;  %vm184_vm1 = vcmask (!%p137_p2), 523264  }
   0x7   : > { %v496_v8 = vpack.c.bf16 (!%p137_p2), %v414_v5, %v413_v2  ;;  %v415_v9 = vld [vmem:[%s628_s1 + $0x50] sm:$0xff] (!%p137_p2)  ;;  %v416_v10 = vld [vmem:[%s628_s1 + $0x58] sm:$0xff] (!%p137_p2)  ;;  %461 = vmatprep.mubr.msk.f32.mxu0 (!%p137_p2), %vm527_vm0, %v528_v11  ;;  %480 = vmatprep.mubr.msk.f32.mxu1 (!%p137_p2), %vm527_vm0, %v528_v11  ;;  %v487_v12 = vpack.c.bf16 (!%p137_p2), %v172_v7, %v171_v6  ;;  %v173_v14 = vld [vmem:[%s628_s1 + $0x20] sm:$0xff] (!%p137_p2)  ;;  %vm258_vm2 = vcmask (!%p137_p2), 588800  }
   0x8   : > { %485 = vmatpush3.bf16.msra.mxu0 (!%p137_p2), %v484_v4  ;;  %v499_v13 = vpack.c.bf16 (!%p137_p2), %v416_v10, %v415_v9  ;;  %v174_v15 = vld [vmem:[%s628_s1 + $0x28] sm:$0xff] (!%p137_p2)  ;;  %v417_v16 = vld [vmem:[%s628_s1 + $0x60] sm:$0xff] (!%p137_p2)  ;;  %v175_v20 = vld [vmem:[%s628_s1 + $0x30] sm:$0xff] (!%p137_p2) }
   0x9   : > { %497 = vmatpush3.bf16.msra.mxu1 (!%p137_p2), %v496_v8  ;;  %486 = vmatprep.subr.bf16.mxu0 (!%p137_p2), %v526_v3  ;;  %v418_v17 = vld [vmem:[%s628_s1 + $0x68] sm:$0xff] (!%p137_p2)  ;;  %v490_v18 = vpack.c.bf16 (!%p137_p2), %v174_v15, %v173_v14  ;;  %v176_v21 = vld [vmem:[%s628_s1 + $0x38] sm:$0xff] (!%p137_p2)  ;;  %v419_v22 = vld [vmem:[%s628_s1 + $0x70] sm:$0xff] (!%p137_p2) }
   0xa   : > { %498 = vmatprep.subr.bf16.mxu1 (!%p137_p2), %v526_v3  ;;  %v502_v19 = vpack.c.bf16 (!%p137_p2), %v418_v17, %v417_v16  ;;  %v420_v23 = vld [vmem:[%s628_s1 + $0x78] sm:$0xff] (!%p137_p2)  ;;  %v493_v24 = vpack.c.bf16 (!%p137_p2), %v176_v21, %v175_v20  ;;  %v411_v27 = vld [vmem:[%s629_s2] ss:$0 sm:$0xff] (!%p137_p2) }
   0xb   : > { %v505_v25 = vpack.c.bf16 (!%p137_p2), %v420_v23, %v419_v22 }
   0xc   : > { %488 = vmatpush3.bf16.msra.mxu0 (!%p137_p2), %v487_v12 }
   0xd   : > { %s633_s13 = smov (!%p577_p3, %s403_s13), 1  ;;  %500 = vmatpush3.bf16.msra.mxu1 %v499_v13  ;;  %489 = vmatprep.subr.bf16.mxu0 %v526_v3 }
   0xe   : > { %501 = vmatprep.subr.bf16.mxu1 %v526_v3  ;;  %s408_s22 = sshll.u32 %s633_s13, 3  ;;  %s426_s26 = sshll.u32 %s633_s13, 4 }
   0xf   : > { %s162_s25 = scalar_lea.vmem %s627_s0, %s408_s22  ;;  %s167_s4 = scalar_lea.vmem %s630_s3, %s426_s26 }
  0x10   : > { %491 = vmatpush3.bf16.msra.mxu0 %v490_v18  ;;  %v168_v26 = vld [vmem:[%s162_s25] sm:$0xff] }
  0x11   : > { %503 = vmatpush3.bf16.msra.mxu1 %v502_v19  ;;  %492 = vmatprep.subr.bf16.mxu0 %v526_v3 }
  0x12   : > { %504 = vmatprep.subr.bf16.mxu1 %v526_v3 }
  0x14   : > { %494 = vmatpush3.bf16.msra.mxu0 %v493_v24 }
  0x15   : > { %506 = vmatpush3.bf16.msra.mxu1 %v505_v25 }
  0x17   : > { %462 = vmatmul.mubr.msk.f32.vlgmr.msra.gmra.mrb[0].mxu0 %vm184_vm1, %v168_v26 }
  0x18   : > { %481 = vmatmul.mubr.msk.f32.vlgmr.msra.gmra.mrb[0].mxu1 %vm184_vm1, %v168_v26 }
  0xea   : > { %v254_v28 = vpop.f32.mrb[0].mxu0 }
  0xeb   : > { %v255_v29 = vadd.f32 %v411_v27, %v254_v28  ;;  %v342_v30 = vpop.f32.mrb[0].mxu1  ;;  %v463_v31 = vpop.f32.mrb[1].mxu0 }
  0xec   : > { %v343_v32 = vadd.f32 %v411_v27, %v342_v30  ;;  %v482_v33 = vpop.f32.mrb[1].mxu1 }
  0xed   : > { %259 = vst.msk [vmem:[%s167_s4] sm:$0xff] %vm258_vm2, %v255_v29 }
  0xee   : > { %423 = vst.msk [vmem:[%s167_s4 + $0x8] sm:$0xff] %vm258_vm2, %v343_v32 }
  0xef PF: > { %s13_s12 = sadd.s32 1, %s524_s12  }
  0xf0   : > { %p10_p4 = scmp.ge.s32.totalorder %s13_s12, 4  }
  0xf2   :  { %12 = sbr.rel (!%p10_p4) target bundleno = 1 (0x1), region = 64 }

// kernel: unet_up_forward.5
= control target key start
LH: loop header
LB: loop body
LE: loop exit
PB: predicated region body
PF: predicated region fallthrough
CT: control target
= control target key end

     0   :  { %s1453_s24 = smov 0   ;;  %s1707_s0 = inlined_call_operand.vmem [shape: f32[2,18,72], index: 0, kind: input, shape index: {}]   ;;  %s1708_s1 = inlined_call_operand.vmem [shape: f32[2,18,72], index: 1, kind: input, shape index: {}]   ;;  %s1709_s2 = inlined_call_operand.vmem [shape: f32[3,72,128], index: 2, kind: input, shape index: {}]   ;;  %s1710_s3 = inlined_call_operand.vmem [shape: f32[3,72,128], index: 3, kind: input, shape index: {}]   ;;  %s1711_s4 = inlined_call_operand.vmem [shape: f32[1,128], index: 4, kind: input, shape index: {}]   ;;  %s1712_s5 = inlined_call_operand.vmem [shape: f32[2,16,128], index: 5, kind: output, shape index: {0}]   ;;  %s1713_s6 = inlined_call_operand.vmem [shape: f32[2,1,128], index: 6, kind: output, shape index: {1}]   ;;  %s1714_s7 = inlined_call_operand.vmem [shape: f32[2,1,128], index: 7, kind: output, shape index: {2}]  }
   0x1 LB: > { %s1037_s25 = sadd.s32 4294967295, %s1411_s24   ;;  %p1041_p0 = scmp.ge.s32.totalorder %s1411_s24, 1  ;;  %s1411_s24 = sphi %s1453_s24, %s18_s24  }
   0x2   : > { %p252_p1 = scmp.lt.s32.totalorder %s1411_s24, 3 }
   0x4   : > { %p253_p2 = pnand %p1041_p0, %p252_p1 }
   0x5   : > { %v331_v0 = vld [vmem:[%s1710_s3] sm:$0xff] (!%p253_p2)  ;;  %v332_v1 = vld [vmem:[%s1710_s3 + $0x8] sm:$0xff] (!%p253_p2)  ;;  %p295_p3 = scmp.lt.s32.totalorder (!%p253_p2), %s1037_s25, 1  ;;  %v1062_v4 = vld [vmem:[%s1710_s3 + $0x50] sm:$0xff] (!%p253_p2)  ;;  %vm340_vm0 = vcmask (!%p253_p2), 588800   ;;  %vm514_vm1 = vcmask (!%p253_p2), 1046528  }
   0x6   : > { %256 = sbr.rel (%p253_p2) target bundleno = 299 (0x12b), region = 40  ;;  %v1061_v2 = vld [vmem:[%s1710_s3 + $0x48] sm:$0xff] (!%p253_p2)  ;;  %v1290_v3 = vpack.c.bf16 (!%p253_p2), %v332_v1, %v331_v0  ;;  %v333_v5 = vld [vmem:[%s1710_s3 + $0x10] sm:$0xff] (!%p253_p2)  ;;  %v334_v6 = vld [vmem:[%s1710_s3 + $0x18] sm:$0xff] (!%p253_p2)  ;;  %vm708_vm2 = vcmask (!%p253_p2), 1045504  }
   0x7   : > { %v1338_v7 = vpack.c.bf16 (!%p253_p2), %v1062_v4, %v1061_v2  ;;  %v1294_v8 = vpack.c.bf16 (!%p253_p2), %v334_v6, %v333_v5  ;;  %v1063_v9 = vld [vmem:[%s1710_s3 + $0x58] sm:$0xff] (!%p253_p2)  ;;  %v1064_v10 = vld [vmem:[%s1710_s3 + $0x60] sm:$0xff] (!%p253_p2)  ;;  %v336_v13 = vld [vmem:[%s1710_s3 + $0x28] sm:$0xff] (!%p253_p2) }
   0x8   : > { %v335_v11 = vld [vmem:[%s1710_s3 + $0x20] sm:$0xff] (!%p253_p2)  ;;  %1291 = vmatprep.subr.bf16.mxu1 (!%p253_p2), %v1290_v3  ;;  %v1342_v12 = vpack.c.bf16 (!%p253_p2), %v1064_v10, %v1063_v9  ;;  %v1065_v14 = vld [vmem:[%s1710_s3 + $0x68] sm:$0xff] (!%p253_p2)  ;;  %v1066_v15 = vld [vmem:[%s1710_s3 + $0x70] sm:$0xff] (!%p253_p2) }
   0x9   : > { %1339 = vmatprep.subr.bf16.mxu0 (!%p253_p2), %v1338_v7  ;;  %1293 = vmatpush3.bf16.msra.mxu1 (!%p253_p2), %v1290_v3  ;;  %v1298_v16 = vpack.c.bf16 (!%p253_p2), %v336_v13, %v335_v11  ;;  %v1346_v17 = vpack.c.bf16 (!%p253_p2), %v1066_v15, %v1065_v14  ;;  %v337_v18 = vld [vmem:[%s1710_s3 + $0x30] sm:$0xff] (!%p253_p2)  ;;  %v338_v19 = vld [vmem:[%s1710_s3 + $0x38] sm:$0xff] (!%p253_p2)  ;;  %v1068_v21 = vld [vmem:[%s1710_s3 + $0x80] sm:$0xff] (!%p253_p2) }
   0xa   : > { %1341 = vmatpush3.bf16.msra.mxu0 (!%p253_p2), %v1338_v7  ;;  %1295 = vmatprep.subr.bf16.mxu1 (!%p253_p2), %v1294_v8  ;;  %v1067_v20 = vld [vmem:[%s1710_s3 + $0x78] sm:$0xff] (!%p253_p2)  ;;  %v1302_v25 = vpack.c.bf16 (!%p253_p2), %v338_v19, %v337_v18  ;;  %v339_v30 = vld [vmem:[%s1710_s3 + $0x40] sm:$0xff] (!%p253_p2)  ;;  %v323_v32 = vld [vmem:[%s1709_s2 + $0x8] sm:$0xff] (!%p253_p2) }
   0xb   : > { %1343 = vmatprep.subr.bf16.mxu0 (!%p253_p2), %v1342_v12  ;;  %v1350_v27 = vpack.c.bf16 (!%p253_p2), %v1068_v21, %v1067_v20  ;;  %v322_v31 = vld [vmem:[%s1709_s2] sm:$0xff] (!%p253_p2)  ;;  %v1069_v33 = vld [vmem:[%s1710_s3 + $0x88] sm:$0xff] (!%p253_p2)  ;;  %v1072_v34 = vld [vmem:[%s1709_s2 + $0x90] sm:$0xff] (!%p253_p2) }
   0xc   : > { %v1073_v35 = vld [vmem:[%s1709_s2 + $0x98] sm:$0xff] (!%p253_p2)  ;;  %v1306_v39 = vpack.c.bf16 (!%p253_p2), %v323_v32, %v322_v31  ;;  %v324_v40 = vld [vmem:[%s1709_s2 + $0x10] sm:$0xff] (!%p253_p2)  ;;  %v1074_v43 = vld [vmem:[%s1709_s2 + $0xa0] sm:$0xff] (!%p253_p2) }
   0xd   : > { %s1716_s25 = smov (!%p295_p3, %s1037_s25), 1  ;;  %1297 = vmatpush3.bf16.msra.mxu1 %v1294_v8  ;;  %v325_v41 = vld [vmem:[%s1709_s2 + $0x18] sm:$0xff]  ;;  %v1354_v42 = vpack.c.bf16 %v1073_v35, %v1072_v34  ;;  %v1075_v44 = vld [vmem:[%s1709_s2 + $0xa8] sm:$0xff]  ;;  %v326_v50 = vld [vmem:[%s1709_s2 + $0x20] sm:$0xff] }
   0xe   : > { %s1396_s29 = smul.u32 24, %s1716_s25  ;;  %1345 = vmatpush3.bf16.msra.mxu0 %v1342_v12  ;;  %1299 = vmatprep.subr.bf16.mxu1 %v1298_v16  ;;  %v1310_v48 = vpack.c.bf16 %v325_v41, %v324_v40  ;;  %v1358_v49 = vpack.c.bf16 %v1075_v44, %v1074_v43  ;;  %v327_v51 = vld [vmem:[%s1709_s2 + $0x28] sm:$0xff]  ;;  %v1076_v52 = vld [vmem:[%s1709_s2 + $0xb0] sm:$0xff]  ;;  %v1077_v53 = vld [vmem:[%s1709_s2 + $0xb8] sm:$0xff]  ;;  %s1097_s14 = sshll.u32 %s1716_s25, 4 }
   0xf   : > { %1347 = vmatprep.subr.bf16.mxu0 %v1346_v17  ;;  %v1314_v55 = vpack.c.bf16 %v327_v51, %v326_v50  ;;  %v1362_v56 = vpack.c.bf16 %v1077_v53, %v1076_v52  ;;  %v328_v57 = vld [vmem:[%s1709_s2 + $0x30] sm:$0xff]  ;;  %v329_v58 = vld [vmem:[%s1709_s2 + $0x38] sm:$0xff]  ;;  %v1078_v59 = vld [vmem:[%s1709_s2 + $0xc0] sm:$0xff]  ;;  %s309_s19 = scalar_lea.vmem %s1712_s5, %s1097_s14  ;;  %s312_s23 = scalar_lea.vmem %s1713_s6, %s1716_s25 }
  0x10   : > { %s304_s15 = scalar_lea.vmem %s1708_s1, %s1396_s29  ;;  %s1534_s20 = scalar_lea.vmem %s1707_s0, %s1396_s29  ;;  %v1079_v60 = vld [vmem:[%s1709_s2 + $0xc8] sm:$0xff]  ;;  %v1318_v61 = vpack.c.bf16 %v329_v58, %v328_v57  ;;  %v330_v0 = vld [vmem:[%s1709_s2 + $0x40] sm:$0xff]  ;;  %v1051_v2 = vld [vmem:[%s1709_s2 + $0x50] sm:$0xff] }
  0x11   : > { %v1517_v22 = vld [vmem:[%s304_s15] sm:$0xff]  ;;  %v1519_v23 = vld [vmem:[%s304_s15 + $0x8] sm:$0xff]  ;;  %1301 = vmatpush3.bf16.msra.mxu1 %v1298_v16  ;;  %v1527_v29 = vld [vmem:[%s304_s15 + $0x10] sm:$0x3]  ;;  %v1366_v62 = vpack.c.bf16 %v1079_v60, %v1078_v59 }
  0x12   : > { %1182 = vmatprep.mubr.msk.f32.mxu1 %vm340_vm0, %v1517_v22  ;;  %v612_v24 = vrot.slane %v1517_v22, 1  ;;  %v613_v26 = vrot.slane %v1519_v23, 1  ;;  %1349 = vmatpush3.bf16.msra.mxu0 %v1346_v17  ;;  %v615_v36 = vrot.slane %v1527_v29, 1  ;;  %v1556_v37 = vld [vmem:[%s1534_s20] sm:$0xff]  ;;  %v1559_v38 = vld [vmem:[%s1534_s20 + $0x8] sm:$0xff]  ;;  %v1080_v3 = vld [vmem:[%s1709_s2 + $0xd0] sm:$0xff] }
  0x13   : > { %1303 = vmatprep.subr.bf16.mxu1 %v1302_v25  ;;  %1351 = vmatprep.subr.bf16.mxu0 %v1350_v27  ;;  %v709_v45 = vrot.slane %v1556_v37, 2  ;;  %v710_v46 = vrot.slane %v1559_v38, 2  ;;  %v1608_v63 = vld [vmem:[%s1534_s20 + $0x10] sm:$0x3]  ;;  %v1050_v1 = vld [vmem:[%s1709_s2 + $0x48] sm:$0xff]  ;;  %v1084_v5 = vld [vmem:[%s1710_s3 + $0x98] sm:$0xff]  ;;  %s315_s20 = scalar_lea.vmem %s1714_s7, %s1716_s25 }
  0x14   : > { %v614_v28 = vsel %vm514_vm1, %v612_v24, %v613_v26  ;;  %v616_v47 = vsel %vm514_vm1, %v613_v26, %v615_v36  ;;  %v1083_v4 = vld [vmem:[%s1710_s3 + $0x90] sm:$0xff]  ;;  %v712_v6 = vrot.slane %v1608_v63, 2  ;;  %v1322_v7 = vpack.c.bf16 %v1051_v2, %v1050_v1  ;;  %v1052_v8 = vld [vmem:[%s1709_s2 + $0x58] sm:$0xff]  ;;  %v1053_v9 = vld [vmem:[%s1709_s2 + $0x60] sm:$0xff] }
  0x15   : > { %1245 = vmatprep.mubr.msk.f32.mxu0 %vm340_vm0, %v614_v28  ;;  %1305 = vmatpush3.bf16.msra.mxu1 %v1302_v25  ;;  %v711_v54 = vsel %vm708_vm2, %v709_v45, %v710_v46  ;;  %v515_v10 = vrot.slane %v1556_v37, 1  ;;  %v1370_v11 = vpack.c.bf16 %v1084_v5, %v1083_v4  ;;  %v1085_v12 = vld [vmem:[%s1710_s3 + $0xa0] sm:$0xff]  ;;  %v1086_v13 = vld [vmem:[%s1710_s3 + $0xa8] sm:$0xff]  ;;  %v516_v14 = vrot.slane %v1559_v38, 1  ;;  %v1055_v21 = vld [vmem:[%s1709_s2 + $0x70] sm:$0xff] }
  0x16   : > { %1353 = vmatpush3.bf16.msra.mxu0 %v1350_v27  ;;  %1180 = vmatprep.subr.mxu1 %v339_v30  ;;  %v805_v15 = vrot.slane %v1517_v22, 2  ;;  %v806_v16 = vrot.slane %v1519_v23, 2  ;;  %v713_v17 = vsel %vm708_vm2, %v710_v46, %v712_v6  ;;  %v1326_v18 = vpack.c.bf16 %v1053_v9, %v1052_v8  ;;  %v1054_v20 = vld [vmem:[%s1709_s2 + $0x68] sm:$0xff]  ;;  %v1087_v22 = vld [vmem:[%s1710_s3 + $0xb0] sm:$0xff]  ;;  %v1056_v28 = vld [vmem:[%s1709_s2 + $0x78] sm:$0xff] }
  0x17   : > { %1243 = vmatprep.subr.mxu0 %v1069_v33  ;;  %v1374_v19 = vpack.c.bf16 %v1086_v13, %v1085_v12  ;;  %v517_v24 = vsel %vm514_vm1, %v515_v10, %v516_v14  ;;  %v1330_v26 = vpack.c.bf16 %v1055_v21, %v1054_v20  ;;  %v1089_v31 = vld [vmem:[%s1710_s3 + $0xc0] sm:$0xff]  ;;  %v1090_v32 = vld [vmem:[%s1710_s3 + $0xc8] sm:$0xff]  ;;  %v518_v35 = vrot.slane %v1608_v63, 1 }
  0x18   : > { %v807_v25 = vsel %vm708_vm2, %v805_v15, %v806_v16  ;;  %v1382_v34 = vpack.c.bf16 %v1090_v32, %v1089_v31  ;;  %v1058_v36 = vld [vmem:[%s1709_s2 + $0x88] sm:$0xff] }
  0x19   : > { %1181 = vmatpush3.msra.mxu1 %v339_v30  ;;  %v1057_v30 = vld [vmem:[%s1709_s2 + $0x80] sm:$0xff] }
  0x1a   : > { %1244 = vmatpush3.msra.mxu0 %v1069_v33  ;;  %1307 = vmatprep.subr.bf16.mxu1 %v1306_v39  ;;  %v1334_v33 = vpack.c.bf16 %v1057_v30, %v1056_v28 }
  0x1b   : > { %1355 = vmatprep.subr.bf16.mxu0 %v1354_v42  ;;  %1183 = vmatmul.mubr.msk.f32.vlgmr.msra.gmra.mrb[0].mxu1 %vm340_vm0, %v1519_v23  ;;  %v1088_v23 = vld [vmem:[%s1710_s3 + $0xb8] sm:$0xff] }
  0x1c   : > { %1309 = vmatpush3.bf16.msra.mxu1 %v1306_v39  ;;  %1246 = vmatmul.mubr.msk.f32.vlgmr.msra.gmra.mrb[0].mxu0 %vm340_vm0, %v616_v47  ;;  %v1378_v27 = vpack.c.bf16 %v1088_v23, %v1087_v22  ;;  %v519_v39 = vsel %vm514_vm1, %v516_v14, %v518_v35 }
  0x1d   : > { %1357 = vmatpush3.bf16.msra.mxu0 %v1354_v42  ;;  %1311 = vmatprep.subr.bf16.mxu1 %v1310_v48  ;;  %v1094_v42 = vld [vmem:[%s1711_s4] ss:$0 sm:$0xff] }
  0x1e   : > { %1359 = vmatprep.subr.bf16.mxu0 %v1358_v49  ;;  %1203 = vmatprep.mubr.msk.f32.mxu1 %vm340_vm0, %v1556_v37  ;;  %v808_v37 = vrot.slane %v1527_v29, 2 }
  0x1f   : > { %1266 = vmatprep.mubr.msk.f32.mxu0 %vm340_vm0, %v711_v54 }
  0x20   : > { %1313 = vmatpush3.bf16.msra.mxu1 %v1310_v48  ;;  %v809_v40 = vsel %vm708_vm2, %v806_v16, %v808_v37 }
  0x21   : > { %1361 = vmatpush3.bf16.msra.mxu0 %v1358_v49  ;;  %1315 = vmatprep.subr.bf16.mxu1 %v1314_v55 }
  0x22   : > { %1363 = vmatprep.subr.bf16.mxu0 %v1362_v56 }
  0x24   : > { %1317 = vmatpush3.bf16.msra.mxu1 %v1314_v55 }
  0x25   : > { %1365 = vmatpush3.bf16.msra.mxu0 %v1362_v56  ;;  %1319 = vmatprep.subr.bf16.mxu1 %v1318_v61 }
  0x26   : > { %1367 = vmatprep.subr.bf16.mxu0 %v1366_v62 }
  0x28   : > { %1321 = vmatpush3.bf16.msra.mxu1 %v1318_v61 }
  0x29   : > { %1369 = vmatpush3.bf16.msra.mxu0 %v1366_v62  ;;  %1201 = vmatprep.subr.mxu1 %v330_v0 }
  0x2a   : > { %1264 = vmatprep.subr.mxu0 %v1080_v3 }
  0x2c   : > { %1202 = vmatpush3.msra.mxu1 %v330_v0 }
  0x2d   : > { %1265 = vmatpush3.msra.mxu0 %v1080_v3  ;;  %1323 = vmatprep.subr.bf16.mxu1 %v1322_v7 }
  0x2e   : > { %1371 = vmatprep.subr.bf16.mxu0 %v1370_v11  ;;  %1204 = vmatmul.mubr.msk.f32.vlgmr.msra.gmra.mrb[0].mxu1 %vm340_vm0, %v1559_v38  ;;  %v1091_v38 = vld [vmem:[%s1710_s3 + $0xd0] sm:$0xff] }
  0x2f   : > { %1325 = vmatpush3.bf16.msra.mxu1 %v1322_v7  ;;  %1267 = vmatmul.mubr.msk.f32.vlgmr.msra.gmra.mrb[0].mxu0 %vm340_vm0, %v713_v17 }
  0x30   : > { %1373 = vmatpush3.bf16.msra.mxu0 %v1370_v11  ;;  %1327 = vmatprep.subr.bf16.mxu1 %v1326_v18 }
  0x31   : > { %1375 = vmatprep.subr.bf16.mxu0 %v1374_v19  ;;  %1224 = vmatprep.mubr.msk.f32.mxu1 %vm340_vm0, %v517_v24 }
  0x32   : > { %1287 = vmatprep.mubr.msk.f32.mxu0 %vm340_vm0, %v807_v25 }
  0x33   : > { %1329 = vmatpush3.bf16.msra.mxu1 %v1326_v18 }
  0x34   : > { %1377 = vmatpush3.bf16.msra.mxu0 %v1374_v19  ;;  %1331 = vmatprep.subr.bf16.mxu1 %v1330_v26 }
  0x35   : > { %1379 = vmatprep.subr.bf16.mxu0 %v1378_v27 }
  0x37   : > { %1333 = vmatpush3.bf16.msra.mxu1 %v1330_v26 }
  0x38   : > { %1381 = vmatpush3.bf16.msra.mxu0 %v1378_v27  ;;  %1335 = vmatprep.subr.bf16.mxu1 %v1334_v33 }
  0x39   : > { %1383 = vmatprep.subr.bf16.mxu0 %v1382_v34 }
  0x3b   : > { %1337 = vmatpush3.bf16.msra.mxu1 %v1334_v33 }
  0x3c   : > { %1385 = vmatpush3.bf16.msra.mxu0 %v1382_v34  ;;  %1222 = vmatprep.subr.mxu1 %v1058_v36 }
  0x3d   : > { %1285 = vmatprep.subr.mxu0 %v1091_v38 }
  0x3f   : > { %1223 = vmatpush3.msra.mxu1 %v1058_v36 }
  0x40   : > { %1286 = vmatpush3.msra.mxu0 %v1091_v38  ;;  %1225 = vmatmul.mubr.msk.f32.vlgmr.msra.gmra.mrb[0].mxu1 %vm340_vm0, %v519_v39 }
  0x41   : > { %1288 = vmatmul.mubr.msk.f32.vlgmr.msra.gmra.mrb[0].mxu0 %vm340_vm0, %v809_v40 }
 0x113   : > { %v1226_v41 = vpop.f32.mrb[0].mxu1 }
 0x114   : > { %v1289_v29 = vpop.f32.mrb[0].mxu0  ;;  %v590_v43 = vpop.f32.mrb[1].mxu1 }
 0x115   : > { %v1386_v44 = vadd.f32 %v1289_v29, %v1226_v41  ;;  %v880_v45 = vpop.f32.mrb[1].mxu0 }
 0x116   : > { %v1387_v46 = vadd.f32 %v880_v45, %v590_v43 }
 0x117   : > { %v899_v47 = vadd.f32 %v1386_v44, %v1094_v42 }
 0x118   : > { %v898_v48 = vadd.f32 %v1387_v46, %v1094_v42 }
 0x119   : > { %901 = vst [vmem:[%s309_s19 + $0x8] sm:$0xff] %v899_v47  ;;  %v911_v49 = vmul.f32 %v899_v47, %v899_v47 }
 0x11a   : > { %900 = vst [vmem:[%s309_s19] sm:$0xff] %v898_v48  ;;  %v902_v50 = vadd.f32 %v899_v47, %v898_v48  ;;  %v910_v51 = vmul.f32 %v898_v48, %v898_v48 }
 0x11c   : > { %v903_v52 = vrot.slane %v902_v50, 4  ;;  %v912_v53 = vadd.f32 %v911_v49, %v910_v51 }
 0x11e   : > { %v904_v54 = vadd.f32 %v903_v52, %v902_v50  ;;  %v913_v55 = vrot.slane %v912_v53, 4 }
 0x120   : > { %v905_v56 = vrot.slane %v904_v54, 2  ;;  %v914_v57 = vadd.f32 %v913_v55, %v912_v53 }
 0x122   : > { %v906_v58 = vadd.f32 %v905_v56, %v904_v54  ;;  %v915_v59 = vrot.slane %v914_v57, 2 }
 0x124   : > { %v907_v60 = vrot.slane %v906_v58, 1  ;;  %v916_v61 = vadd.f32 %v915_v59, %v914_v57 }
 0x126   : > { %v908_v62 = vadd.f32 %v907_v60, %v906_v58  ;;  %v917_v63 = vrot.slane %v916_v61, 1 }
 0x128   : > { %909 = vst [vmem:[%s312_s23] sm:$0x1] %v908_v62  ;;  %v918_v0 = vadd.f32 %v917_v63, %v916_v61 }
 0x12a   : > { %919 = vst [vmem:[%s315_s20] sm:$0x1] %v918_v0 }
 0x12b PF: > { %s18_s24 = sadd.s32 1, %s1411_s24  }
 0x12c   : > { %p15_p4 = scmp.ge.s32.totalorder %s18_s24, 4  }
 0x12e   :  { %17 = sbr.rel (!%p15_p4) target bundleno = 1 (0x1), region = 101 }

// kernel: unet_up_forward.6
= control target key start
LH: loop header
LB: loop body
LE: loop exit
PB: predicated region body
PF: predicated region fallthrough
CT: control target
= control target key end

     0   :  { %s1111_s24 = smov 0   ;;  %s1310_s0 = inlined_call_operand.vmem [shape: f32[2,16,128], index: 0, kind: input, shape index: {}]   ;;  %s1311_s1 = inlined_call_operand.vmem [shape: f32[1,128], index: 1, kind: input, shape index: {}]   ;;  %s1312_s2 = inlined_call_operand.vmem [shape: f32[1,128], index: 2, kind: input, shape index: {}]   ;;  %s1313_s3 = inlined_call_operand.vmem [shape: f32[3,128,128], index: 3, kind: input, shape index: {}]   ;;  %s1314_s4 = inlined_call_operand.vmem [shape: f32[1,128], index: 4, kind: input, shape index: {}]   ;;  %s1315_s5 = inlined_call_operand.vmem [shape: f32[2,16,128], index: 5, kind: output, shape index: {0}]   ;;  %s1316_s6 = inlined_call_operand.vmem [shape: f32[2,1,128], index: 6, kind: output, shape index: {1}]   ;;  %s1317_s7 = inlined_call_operand.vmem [shape: f32[2,1,128], index: 7, kind: output, shape index: {2}]  }
   0x1 LB: > { %s745_s25 = sadd.s32 4294967295, %s1069_s24   ;;  %p749_p0 = scmp.ge.s32.totalorder %s1069_s24, 1  ;;  %s1069_s24 = sphi %s1111_s24, %s18_s24  }
   0x2   : > { %p242_p1 = scmp.lt.s32.totalorder %s1069_s24, 3 }
   0x4   : > { %p243_p2 = pnand %p749_p0, %p242_p1 }
   0x5   : > { %v334_v0 = vld [vmem:[%s1313_s3] sm:$0xff] (!%p243_p2)  ;;  %v335_v1 = vld [vmem:[%s1313_s3 + $0x8] sm:$0xff] (!%p243_p2)  ;;  %v336_v2 = vld [vmem:[%s1313_s3 + $0x10] sm:$0xff] (!%p243_p2)  ;;  %p280_p3 = scmp.lt.s32.totalorder (!%p243_p2), %s745_s25, 1  ;;  %vm320_vm0 = vcmask (!%p243_p2), 1040384   ;;  %vm327_vm2 = vcmask (!%p243_p2), 1046528  }
   0x6   : > { %246 = sbr.rel (%p243_p2) target bundleno = 306 (0x132), region = 40  ;;  %v987_v3 = vpack.c.bf16 (!%p243_p2), %v335_v1, %v334_v0  ;;  %v337_v4 = vld [vmem:[%s1313_s3 + $0x18] sm:$0xff] (!%p243_p2)  ;;  %v338_v6 = vld [vmem:[%s1313_s3 + $0x20] sm:$0xff] (!%p243_p2)  ;;  %v339_v7 = vld [vmem:[%s1313_s3 + $0x28] sm:$0xff] (!%p243_p2) }
   0x7   : > { %v991_v5 = vpack.c.bf16 (!%p243_p2), %v337_v4, %v336_v2  ;;  %v995_v8 = vpack.c.bf16 (!%p243_p2), %v339_v7, %v338_v6  ;;  %v340_v9 = vld [vmem:[%s1313_s3 + $0x30] sm:$0xff] (!%p243_p2)  ;;  %v756_v10 = vld [vmem:[%s1313_s3 + $0x80] sm:$0xff] (!%p243_p2)  ;;  %v757_v11 = vld [vmem:[%s1313_s3 + $0x88] sm:$0xff] (!%p243_p2) }
   0x8   : > { %988 = vmatprep.subr.bf16.mxu0 (!%p243_p2), %v987_v3  ;;  %v341_v12 = vld [vmem:[%s1313_s3 + $0x38] sm:$0xff] (!%p243_p2)  ;;  %v955_v13 = vpack.c.bf16 (!%p243_p2), %v757_v11, %v756_v10  ;;  %v754_v15 = vld [vmem:[%s1311_s1] ss:$0 sm:$0xff] (!%p243_p2)  ;;  %v758_v18 = vld [vmem:[%s1313_s3 + $0x90] sm:$0xff] (!%p243_p2) }
   0x9   : > { %990 = vmatpush3.bf16.msra.mxu0 (!%p243_p2), %v987_v3  ;;  %v755_v17 = vld [vmem:[%s1312_s2] ss:$0 sm:$0xff] (!%p243_p2)  ;;  %v759_v19 = vld [vmem:[%s1313_s3 + $0x98] sm:$0xff] (!%p243_p2)  ;;  %v999_v20 = vpack.c.bf16 (!%p243_p2), %v341_v12, %v340_v9  ;;  %v343_v24 = vld [vmem:[%s1313_s3 + $0x48] sm:$0xff] (!%p243_p2) }
   0xa   : > { %992 = vmatprep.subr.bf16.mxu0 (!%p243_p2), %v991_v5  ;;  %956 = vmatprep.subr.bf16.mxu1 (!%p243_p2), %v955_v13  ;;  %v760_v22 = vld [vmem:[%s1313_s3 + $0xa0] sm:$0xff] (!%p243_p2)  ;;  %v959_v25 = vpack.c.bf16 (!%p243_p2), %v759_v19, %v758_v18  ;;  %v761_v26 = vld [vmem:[%s1313_s3 + $0xa8] sm:$0xff] (!%p243_p2)  ;;  %v762_v29 = vld [vmem:[%s1313_s3 + $0xb0] sm:$0xff] (!%p243_p2) }
   0xb   : > { %958 = vmatpush3.bf16.msra.mxu1 (!%p243_p2), %v955_v13  ;;  %v342_v23 = vld [vmem:[%s1313_s3 + $0x40] sm:$0xff] (!%p243_p2)  ;;  %v963_v28 = vpack.c.bf16 (!%p243_p2), %v761_v26, %v760_v22  ;;  %v763_v30 = vld [vmem:[%s1313_s3 + $0xb8] sm:$0xff] (!%p243_p2)  ;;  %vm772_vm1 = vmneg (!%p243_p2), %vm320_vm0 }
   0xc   : > { %960 = vmatprep.subr.bf16.mxu1 (!%p243_p2), %v959_v25  ;;  %v1003_v31 = vpack.c.bf16 (!%p243_p2), %v343_v24, %v342_v23  ;;  %v344_v34 = vld [vmem:[%s1313_s3 + $0x50] sm:$0xff] (!%p243_p2)  ;;  %v345_v35 = vld [vmem:[%s1313_s3 + $0x58] sm:$0xff] (!%p243_p2)  ;;  %v967_v36 = vpack.c.bf16 (!%p243_p2), %v763_v30, %v762_v29  ;;  %v764_v37 = vld [vmem:[%s1313_s3 + $0xc0] sm:$0xff] (!%p243_p2) }
   0xd   : > { %s1319_s25 = smov (!%p280_p3, %s745_s25), 1  ;;  %994 = vmatpush3.bf16.msra.mxu0 %v991_v5  ;;  %v765_v38 = vld [vmem:[%s1313_s3 + $0xc8] sm:$0xff]  ;;  %v1007_v40 = vpack.c.bf16 %v345_v35, %v344_v34  ;;  %v346_v41 = vld [vmem:[%s1313_s3 + $0x60] sm:$0xff]  ;;  %v766_v44 = vld [vmem:[%s1313_s3 + $0xd0] sm:$0xff] }
   0xe   : > { %s794_s15 = sshll.u32 %s1319_s25, 4  ;;  %996 = vmatprep.subr.bf16.mxu0 %v995_v8  ;;  %v347_v42 = vld [vmem:[%s1313_s3 + $0x68] sm:$0xff]  ;;  %v971_v43 = vpack.c.bf16 %v765_v38, %v764_v37  ;;  %v767_v45 = vld [vmem:[%s1313_s3 + $0xd8] sm:$0xff]  ;;  %v348_v48 = vld [vmem:[%s1313_s3 + $0x70] sm:$0xff]  ;;  %s295_s16 = scalar_lea.vmem %s1317_s7, %s1319_s25 }
   0xf   : > { %s284_s26 = scalar_lea.vmem %s1310_s0, %s794_s15  ;;  %962 = vmatpush3.bf16.msra.mxu1 %v959_v25  ;;  %v1011_v47 = vpack.c.bf16 %v347_v42, %v346_v41  ;;  %v349_v49 = vld [vmem:[%s1313_s3 + $0x78] sm:$0xff]  ;;  %v975_v50 = vpack.c.bf16 %v767_v45, %v766_v44  ;;  %v768_v51 = vld [vmem:[%s1313_s3 + $0xe0] sm:$0xff]  ;;  %v769_v52 = vld [vmem:[%s1313_s3 + $0xe8] sm:$0xff]  ;;  %s289_s11 = scalar_lea.vmem %s1315_s5, %s794_s15 }
  0x10   : > { %v296_v14 = vld [vmem:[%s284_s26] sm:$0xff]  ;;  %v297_v32 = vld [vmem:[%s284_s26 + $0x8] sm:$0xff]  ;;  %964 = vmatprep.subr.bf16.mxu1 %v963_v28  ;;  %v1015_v54 = vpack.c.bf16 %v349_v49, %v348_v48  ;;  %v979_v57 = vpack.c.bf16 %v769_v52, %v768_v51  ;;  %v770_v58 = vld [vmem:[%s1313_s3 + $0xf0] sm:$0xff]  ;;  %s292_s26 = scalar_lea.vmem %s1316_s6, %s1319_s25 }
  0x11   : > { %v305_v16 = vmul.f32 %v754_v15, %v296_v14  ;;  %998 = vmatpush3.bf16.msra.mxu0 %v995_v8  ;;  %v306_v39 = vmul.f32 %v754_v15, %v297_v32  ;;  %v774_v55 = vld [vmem:[%s1313_s3 + $0x100] sm:$0xff]  ;;  %v775_v56 = vld [vmem:[%s1313_s3 + $0x108] sm:$0xff]  ;;  %v771_v59 = vld [vmem:[%s1313_s3 + $0xf8] sm:$0xff] }
  0x12   : > { %1000 = vmatprep.subr.bf16.mxu0 %v999_v20  ;;  %v1019_v61 = vpack.c.bf16 %v775_v56, %v774_v55  ;;  %v776_v0 = vld [vmem:[%s1313_s3 + $0x110] sm:$0xff]  ;;  %v777_v1 = vld [vmem:[%s1313_s3 + $0x118] sm:$0xff]  ;;  %v983_v2 = vpack.c.bf16 %v771_v59, %v770_v58  ;;  %v778_v6 = vld [vmem:[%s1313_s3 + $0x120] sm:$0xff] }
  0x13   : > { %v314_v21 = vadd.f32 %v755_v17, %v305_v16  ;;  %966 = vmatpush3.bf16.msra.mxu1 %v963_v28  ;;  %v315_v46 = vadd.f32 %v755_v17, %v306_v39  ;;  %v1023_v4 = vpack.c.bf16 %v777_v1, %v776_v0  ;;  %v779_v7 = vld [vmem:[%s1313_s3 + $0x128] sm:$0xff]  ;;  %v780_v9 = vld [vmem:[%s1313_s3 + $0x130] sm:$0xff]  ;;  %v781_v10 = vld [vmem:[%s1313_s3 + $0x138] sm:$0xff] }
  0x14   : > { %968 = vmatprep.subr.bf16.mxu1 %v967_v36  ;;  %v1027_v8 = vpack.c.bf16 %v779_v7, %v778_v6  ;;  %v1031_v11 = vpack.c.bf16 %v781_v10, %v780_v9  ;;  %v782_v12 = vld [vmem:[%s1313_s3 + $0x140] sm:$0xff]  ;;  %v783_v13 = vld [vmem:[%s1313_s3 + $0x148] sm:$0xff]  ;;  %v784_v15 = vld [vmem:[%s1313_s3 + $0x150] sm:$0xff] }
  0x15   : > { %v1181_v27 = vmax.f32 %v314_v21, 0.0  ;;  %1002 = vmatpush3.bf16.msra.mxu0 %v999_v20  ;;  %v1228_v53 = vmax.f32 %v315_v46, 0.0  ;;  %v1035_v14 = vpack.c.bf16 %v783_v13, %v782_v12  ;;  %v785_v16 = vld [vmem:[%s1313_s3 + $0x158] sm:$0xff]  ;;  %v786_v18 = vld [vmem:[%s1313_s3 + $0x160] sm:$0xff]  ;;  %v787_v19 = vld [vmem:[%s1313_s3 + $0x168] sm:$0xff] }
  0x16   : > { %1004 = vmatprep.subr.bf16.mxu0 %v1003_v31  ;;  %v1039_v17 = vpack.c.bf16 %v785_v16, %v784_v15  ;;  %v1043_v20 = vpack.c.bf16 %v787_v19, %v786_v18  ;;  %v788_v21 = vld [vmem:[%s1313_s3 + $0x170] sm:$0xff]  ;;  %v789_v22 = vld [vmem:[%s1313_s3 + $0x178] sm:$0xff] }
  0x17   : > { %v321_v33 = vrot.slane %v1181_v27, 7  ;;  %882 = vmatprep.mubr.f32.mxu1 %v1181_v27  ;;  %970 = vmatpush3.bf16.msra.mxu1 %v967_v36  ;;  %v322_v60 = vrot.slane %v1228_v53, 7  ;;  %v328_v62 = vrot.slane %v1181_v27, 1  ;;  %v329_v63 = vrot.slane %v1228_v53, 1  ;;  %v791_v27 = vld [vmem:[%s1314_s4] ss:$0 sm:$0xff] }
  0x18   : > { %972 = vmatprep.subr.bf16.mxu1 %v971_v43  ;;  %v1047_v23 = vpack.c.bf16 %v789_v22, %v788_v21 }
  0x19   : > { %917 = vmatprep.mubr.msk.f32.mxu0 %vm772_vm1, %v321_v33  ;;  %1006 = vmatpush3.bf16.msra.mxu0 %v1003_v31  ;;  %v323_v3 = vsel %vm320_vm0, %v321_v33, %v322_v60  ;;  %v330_v5 = vsel %vm327_vm2, %v328_v62, %v329_v63 }
  0x1a   : > { %1008 = vmatprep.subr.bf16.mxu0 %v1007_v40 }
  0x1b   : > { %974 = vmatpush3.bf16.msra.mxu1 %v971_v43 }
  0x1c   : > { %976 = vmatprep.subr.bf16.mxu1 %v975_v50 }
  0x1d   : > { %1010 = vmatpush3.bf16.msra.mxu0 %v1007_v40 }
  0x1e   : > { %1012 = vmatprep.subr.bf16.mxu0 %v1011_v47 }
  0x1f   : > { %978 = vmatpush3.bf16.msra.mxu1 %v975_v50 }
  0x20   : > { %980 = vmatprep.subr.bf16.mxu1 %v979_v57 }
  0x21   : > { %1014 = vmatpush3.bf16.msra.mxu0 %v1011_v47 }
  0x22   : > { %1016 = vmatprep.subr.bf16.mxu0 %v1015_v54 }
  0x23   : > { %982 = vmatpush3.bf16.msra.mxu1 %v979_v57 }
  0x24   : > { %984 = vmatprep.subr.bf16.mxu1 %v983_v2 }
  0x25   : > { %1018 = vmatpush3.bf16.msra.mxu0 %v1015_v54 }
  0x26   : > { %1020 = vmatprep.subr.bf16.mxu0 %v1019_v61 }
  0x27   : > { %986 = vmatpush3.bf16.msra.mxu1 %v983_v2 }
  0x28   : > { %918 = vmatmul.mubr.f32.vlgmr.msra.gmra.mrb[0].mxu0 %v323_v3 }
  0x29   : > { %1022 = vmatpush3.bf16.msra.mxu0 %v1019_v61  ;;  %952 = vmatprep.mubr.f32.mxu0 %v330_v5 }
  0x2a   : > { %1024 = vmatprep.subr.bf16.mxu0 %v1023_v4  ;;  %883 = vmatmul.mubr.f32.vlgmr.msra.gmra.mrb[0].mxu1 %v1228_v53 }
  0x2d   : > { %1026 = vmatpush3.bf16.msra.mxu0 %v1023_v4 }
  0x2e   : > { %1028 = vmatprep.subr.bf16.mxu0 %v1027_v8 }
  0x31   : > { %1030 = vmatpush3.bf16.msra.mxu0 %v1027_v8 }
  0x32   : > { %1032 = vmatprep.subr.bf16.mxu0 %v1031_v11 }
  0x35   : > { %1034 = vmatpush3.bf16.msra.mxu0 %v1031_v11 }
  0x36   : > { %1036 = vmatprep.subr.bf16.mxu0 %v1035_v14 }
  0x39   : > { %1038 = vmatpush3.bf16.msra.mxu0 %v1035_v14 }
  0x3a   : > { %1040 = vmatprep.subr.bf16.mxu0 %v1039_v17 }
  0x3d   : > { %1042 = vmatpush3.bf16.msra.mxu0 %v1039_v17 }
  0x3e   : > { %1044 = vmatprep.subr.bf16.mxu0 %v1043_v20 }
  0x41   : > { %1046 = vmatpush3.bf16.msra.mxu0 %v1043_v20 }
  0x42   : > { %1048 = vmatprep.subr.bf16.mxu0 %v1047_v23 }
  0x45   : > { %1050 = vmatpush3.bf16.msra.mxu0 %v1047_v23 }
  0x48   : > { %953 = vmatmul.mubr.msk.f32.vlgmr.msra.gmra.mrb[0].mxu0 %vm327_vm2, %v329_v63 }
  0xfd   : > { %v884_v24 = vpop.f32.mrb[0].mxu1 }
  0xfe   : > { %v433_v25 = vpop.f32.mrb[1].mxu1 }
 0x11b   : > { %v954_v26 = vpop.f32.mrb[0].mxu0 }
 0x11c   : > { %v1051_v28 = vadd.f32 %v954_v26, %v884_v24  ;;  %v600_v29 = vpop.f32.mrb[1].mxu0 }
 0x11d   : > { %v1052_v30 = vadd.f32 %v600_v29, %v433_v25 }
 0x11e   : > { %v619_v31 = vadd.f32 %v1051_v28, %v791_v27 }
 0x11f   : > { %v618_v32 = vadd.f32 %v1052_v30, %v791_v27 }
 0x120   : > { %621 = vst [vmem:[%s289_s11 + $0x8] sm:$0xff] %v619_v31  ;;  %v631_v33 = vmul.f32 %v619_v31, %v619_v31 }
 0x121   : > { %620 = vst [vmem:[%s289_s11] sm:$0xff] %v618_v32  ;;  %v622_v34 = vadd.f32 %v619_v31, %v618_v32  ;;  %v630_v35 = vmul.f32 %v618_v32, %v618_v32 }
 0x123   : > { %v623_v36 = vrot.slane %v622_v34, 4  ;;  %v632_v37 = vadd.f32 %v631_v33, %v630_v35 }
 0x125   : > { %v624_v38 = vadd.f32 %v623_v36, %v622_v34  ;;  %v633_v39 = vrot.slane %v632_v37, 4 }
 0x127   : > { %v625_v40 = vrot.slane %v624_v38, 2  ;;  %v634_v41 = vadd.f32 %v633_v39, %v632_v37 }
 0x129   : > { %v626_v42 = vadd.f32 %v625_v40, %v624_v38  ;;  %v635_v43 = vrot.slane %v634_v41, 2 }
 0x12b   : > { %v627_v44 = vrot.slane %v626_v42, 1  ;;  %v636_v45 = vadd.f32 %v635_v43, %v634_v41 }
 0x12d   : > { %v628_v46 = vadd.f32 %v627_v44, %v626_v42  ;;  %v637_v47 = vrot.slane %v636_v45, 1 }
 0x12f   : > { %629 = vst [vmem:[%s292_s26] sm:$0x1] %v628_v46  ;;  %v638_v48 = vadd.f32 %v637_v47, %v636_v45 }
 0x131   : > { %639 = vst [vmem:[%s295_s16] sm:$0x1] %v638_v48 }
 0x132 PF: > { %s18_s24 = sadd.s32 1, %s1069_s24  }
 0x133   : > { %p15_p4 = scmp.ge.s32.totalorder %s18_s24, 4  }
 0x135   :  { %17 = sbr.rel (!%p15_p4) target bundleno = 1 (0x1), region = 96 }

// kernel: unet_up_forward.7
= control target key start
LH: loop header
LB: loop body
LE: loop exit
PB: predicated region body
PF: predicated region fallthrough
CT: control target
= control target key end

     0   :  { %s104_s0 = inlined_call_operand.vmem [shape: f32[32,128], index: 0, kind: input, shape index: {}]   ;;  %s105_s1 = inlined_call_operand.vmem [shape: f32[1,128], index: 1, kind: input, shape index: {}]   ;;  %s106_s2 = inlined_call_operand.vmem [shape: f32[1,128], index: 2, kind: input, shape index: {}]   ;;  %s107_s3 = inlined_call_operand.vmem [shape: f32[32,128], index: 3, kind: output, shape index: {}]  }
   0x1   :  { %v14_v0 = vld [vmem:[%s104_s0] sm:$0xff]  ;;  %v15_v4 = vld [vmem:[%s104_s0 + $0x8] sm:$0xff]  ;;  %v16_v5 = vld [vmem:[%s104_s0 + $0x10] sm:$0xff] }
   0x2   :  { %v52_v1 = vld [vmem:[%s105_s1] ss:$0 sm:$0xff]  ;;  %v17_v6 = vld [vmem:[%s104_s0 + $0x18] sm:$0xff] }
   0x3   :  { %v53_v2 = vld [vmem:[%s106_s2] ss:$0 sm:$0xff]  ;;  %v25_v3 = vmul.f32 %v52_v1, %v14_v0  ;;  %v26_v7 = vmul.f32 %v52_v1, %v15_v4  ;;  %v27_v8 = vmul.f32 %v52_v1, %v16_v5  ;;  %v28_v9 = vmul.f32 %v52_v1, %v17_v6 }
   0x5   :  { %v36_v10 = vadd.f32 %v53_v2, %v25_v3  ;;  %v37_v11 = vadd.f32 %v53_v2, %v26_v7  ;;  %v38_v12 = vadd.f32 %v53_v2, %v27_v8  ;;  %v39_v13 = vadd.f32 %v53_v2, %v28_v9 }
   0x7   :  { %v40_v14 = vmax.f32 %v36_v10, 0.0  ;;  %v41_v15 = vmax.f32 %v37_v11, 0.0  ;;  %v42_v16 = vmax.f32 %v38_v12, 0.0  ;;  %v43_v17 = vmax.f32 %v39_v13, 0.0 }
   0x9   :  { %44 = vst [vmem:[%s107_s3] sm:$0xff] %v40_v14  ;;  %45 = vst [vmem:[%s107_s3 + $0x8] sm:$0xff] %v41_v15 }
   0xa   :  { %46 = vst [vmem:[%s107_s3 + $0x10] sm:$0xff] %v42_v16  ;;  %47 = vst [vmem:[%s107_s3 + $0x18] sm:$0xff] %v43_v17 }

</bundles_post_ra>
